<compile_context>
chip_gen: v6e
topology: v6e:2x2x1
jax: 0.10.0
libtpu: 0.0.40
codegen_flags: <defaults>
</compile_context>

<pallas_src>
import functools

import numpy as np
import jax
import jax.numpy as jnp
from jax.experimental import pallas as pl
from jax.experimental.pallas import tpu as pltpu


# ---------------------------------------------------------------------------
# Pallas kernel: fused conv3x3 (implicit im2col) + BN shift + ReLU + adaptive
# average pool.  One grid step processes one batch image, all in VMEM.
# ---------------------------------------------------------------------------
def _maskgen_head_kernel(x_ref, w_ref, shift_ref, pool_ref, o_ref, *,
                         H, W, Cin, Cout):
    # x_ref    : (1, H+2, W+2, Cin)  spatially pre-padded input image
    # w_ref    : (3, 3, Cin, Cout)   conv weight with BN scale pre-folded
    # shift_ref: (1, Cout)           BN shift (beta - running_mean * scale)
    # pool_ref : (ms*ms, H*W)        adaptive-avg-pool matrix (static)
    # o_ref    : (1, ms*ms, Cout)    pooled, post-ReLU gate features
    x = x_ref[0]                                           # (H+2, W+2, Cin)

    # Implicit im2col: accumulate the 9 shifted-window GEMMs on the MXU.
    acc = jnp.zeros((H * W, Cout), jnp.float32)
    for dy in range(3):
        for dx in range(3):
            win = x[dy:dy + H, dx:dx + W, :].reshape(H * W, Cin)
            acc = acc + jnp.dot(win, w_ref[dy, dx],
                                preferred_element_type=jnp.float32)

    # Fused BN-shift + ReLU epilogue (scale already folded into the weights).
    y = jnp.maximum(acc + shift_ref[...], 0.0)             # (H*W, Cout)

    # Fused AdaptiveAvgPool2d as one tiny MXU GEMM: (ms^2, H*W) @ (H*W, Cout).
    o_ref[0] = jnp.dot(pool_ref[...], y, preferred_element_type=jnp.float32)


def _pool_matrix(H, W, ms):
    """AdaptiveAvgPool2d((ms, ms)) as a (ms*ms, H*W) averaging matrix
    (PyTorch bin boundaries). Static, computed on host once per shape."""
    P = np.zeros((ms * ms, H * W), np.float32)
    for i in range(ms):
        hs, he = (i * H) // ms, -(-((i + 1) * H) // ms)
        for j in range(ms):
            ws, we = (j * W) // ms, -(-((j + 1) * W) // ms)
            cnt = float((he - hs) * (we - ws))
            for h in range(hs, he):
                for w in range(ws, we):
                    P[i * ms + j, h * W + w] = 1.0 / cnt
    return jnp.asarray(P)


def maskgen_head(x_nhwc, w_folded, shift, mask_size):
    """Fused conv3x3(pad=1, stride=1, no bias) + BN + ReLU + AdaptiveAvgPool."""
    N, H, W, Cin = x_nhwc.shape
    Cout = w_folded.shape[-1]
    ms = mask_size
    xp = jnp.pad(x_nhwc.astype(jnp.float32), ((0, 0), (1, 1), (1, 1), (0, 0)))
    pool_mat = _pool_matrix(H, W, ms)                      # (ms*ms, H*W)

    kernel = functools.partial(_maskgen_head_kernel, H=H, W=W, Cin=Cin,
                               Cout=Cout)
    out = pl.pallas_call(
        kernel,
        out_shape=jax.ShapeDtypeStruct((N, ms * ms, Cout), jnp.float32),
        grid_spec=pltpu.PrefetchScalarGridSpec(
            num_scalar_prefetch=0,
            grid=(N,),
            in_specs=[
                pl.BlockSpec((1, H + 2, W + 2, Cin), lambda n: (n, 0, 0, 0)),
                pl.BlockSpec((3, 3, Cin, Cout), lambda n: (0, 0, 0, 0)),
                pl.BlockSpec((1, Cout), lambda n: (0, 0)),
                pl.BlockSpec((ms * ms, H * W), lambda n: (0, 0)),
            ],
            out_specs=pl.BlockSpec((1, ms * ms, Cout), lambda n: (n, 0, 0)),
        ),
        compiler_params=pltpu.CompilerParams(
            dimension_semantics=("parallel",)),
    )(xp, w_folded.astype(jnp.float32),
      shift.reshape(1, Cout).astype(jnp.float32), pool_mat)
    return out.reshape(N, ms, ms, Cout)


# ---------------------------------------------------------------------------
# Parameters (mirror the nn.Module), one-time prep, and forward pass.
# ---------------------------------------------------------------------------
def init_maskgen(key, groups=1, inplanes=64, mask_size=7):
    # TODO(synk): grouped (groups > 1) conv paths are not implemented; the
    # sarResNet config uses patch_groups == 1.
    assert groups == 1
    ks = jax.random.split(key, 6)
    c4 = 4 * groups
    conv_w = 0.05 * jax.random.normal(ks[0], (c4, inplanes, 3, 3), jnp.float32)
    gamma = 1.0 + 0.1 * jax.random.normal(ks[1], (c4,), jnp.float32)
    beta = 0.1 * jax.random.normal(ks[2], (c4,), jnp.float32)
    rmean = 0.1 * jax.random.normal(ks[3], (c4,), jnp.float32)
    rvar = 1.0 + 0.1 * jnp.abs(jax.random.normal(ks[4], (c4,), jnp.float32))
    fc_w = 0.05 * jax.random.normal(ks[5], (2 * groups, c4, 1, 1), jnp.float32)
    fc_b = jnp.tile(jnp.array([1.0, 10.0], jnp.float32), groups)  # module init
    return {"conv_w": conv_w, "gamma": gamma, "beta": beta, "rmean": rmean,
            "rvar": rvar, "fc_w": fc_w, "fc_b": fc_b, "groups": groups,
            "mask_size": mask_size}


def prep_maskgen(params, eps=1e-5):
    """Hoisted, one-time parameter prep: fold eval-mode BN into the conv
    weight and reshape weights into the layouts the kernel consumes."""
    scale = params["gamma"] / jnp.sqrt(params["rvar"] + eps)
    shift = params["beta"] - params["rmean"] * scale
    w = params["conv_w"] * scale[:, None, None, None]      # (Cout, Cin, 3, 3)
    w = jnp.transpose(w, (2, 3, 1, 0))                     # (3, 3, Cin, Cout)
    fc_w = jnp.transpose(params["fc_w"][:, :, 0, 0])       # (4G, 2G)
    return {"w_folded": w, "shift": shift, "fc_w": fc_w,
            "fc_b": params["fc_b"], "groups": params["groups"],
            "mask_size": params["mask_size"]}


def maskgen_forward(prepped, x_nchw, temperature=1.0):
    """maskGen.forward (eval mode).  x_nchw: (N, Cin, H, W) like PyTorch."""
    del temperature  # hard argmax is temperature-invariant (see TODO below)
    G, ms = prepped["groups"], prepped["mask_size"]
    N = x_nchw.shape[0]
    x = jnp.transpose(x_nchw, (0, 2, 3, 1)).astype(jnp.float32)    # NHWC
    pooled = maskgen_head(x, prepped["w_folded"], prepped["shift"], ms)
    # Tiny grouped 1x1 conv (fc_gs) + bias: an (N*ms*ms, 4G) x (4G, 2G) GEMM.
    # Kept in plain XLA — padding it to (8,128) MXU tiles would be >95% waste.
    gates = pooled.reshape(N * ms * ms, 4 * G) @ prepped["fc_w"] + prepped["fc_b"]
    gates = gates.reshape(N, ms, ms, G, 2)
    # TODO(synk): GumbleSoftmax source not provided; eval-mode hard argmax
    # (straight-through forward value, no Gumbel noise) is used here.
    hard = (jnp.argmax(gates, axis=-1) == 1).astype(jnp.float32)   # (N,ms,ms,G)
    return jnp.transpose(hard, (0, 3, 1, 2))                       # (N,G,ms,ms)


# ---------------------------------------------------------------------------
# Plain-JAX reference of the fused head (for a correctness cross-check).
# ---------------------------------------------------------------------------
def reference_head(params, x_nchw, eps=1e-5):
    x = jnp.transpose(x_nchw, (0, 2, 3, 1)).astype(jnp.float32)
    N, H, W, Cin = x.shape
    w = params["conv_w"]
    Cout = w.shape[0]
    xp = jnp.pad(x, ((0, 0), (1, 1), (1, 1), (0, 0)))
    conv = jnp.zeros((N, H, W, Cout), jnp.float32)
    for dy in range(3):
        for dx in range(3):
            conv = conv + jnp.einsum('nhwc,oc->nhwo',
                                     xp[:, dy:dy + H, dx:dx + W, :],
                                     w[:, :, dy, dx])
    scale = params["gamma"] / jnp.sqrt(params["rvar"] + eps)
    shift = params["beta"] - params["rmean"] * scale
    y = jnp.maximum(conv * scale + shift, 0.0)
    ms = params["mask_size"]
    rows = []
    for i in range(ms):
        hs, he = (i * H) // ms, -(-((i + 1) * H) // ms)
        cols = []
        for j in range(ms):
            ws, we = (j * W) // ms, -(-((j + 1) * W) // ms)
            cols.append(jnp.mean(y[:, hs:he, ws:we, :], axis=(1, 2)))
        rows.append(jnp.stack(cols, axis=1))
    return jnp.stack(rows, axis=1)                         # (N, ms, ms, Cout)


# ---------------------------------------------------------------------------
if __name__ == "__main__":
    groups, inplanes, mask_size = 1, 64, 2
    key = jax.random.PRNGKey(0)
    kp, kx = jax.random.split(key)
    params = init_maskgen(kp, groups=groups, inplanes=inplanes,
                          mask_size=mask_size)
    prepped = prep_maskgen(params)

    # PyTorch-style NCHW input.
    x = jax.random.normal(kx, (2, inplanes, 16, 16), jnp.float32)

    masks = jax.block_until_ready(maskgen_forward(prepped, x, temperature=1.0))
    assert masks.shape == (2, groups, mask_size, mask_size)
    assert bool(jnp.all((masks == 0.0) | (masks == 1.0)))

    # Cross-check the fused Pallas head against a plain-JAX reference.
    x_nhwc = jnp.transpose(x, (0, 2, 3, 1))
    pooled = jax.block_until_ready(
        maskgen_head(x_nhwc, prepped["w_folded"], prepped["shift"], mask_size))
    pooled_ref = jax.block_until_ready(reference_head(params, x))
    err = float(jnp.max(jnp.abs(pooled - pooled_ref)))
    assert err < 5e-2, f"fused maskGen head mismatch: max abs err {err}"

    print("KERNEL_OK")
</pallas_src>

<mosaic_0001>
module attributes {stable_mosaic.version = 11 : i64} {
  func.func @_maskgen_head_kernel(%arg0: i32, %arg1: memref<1x18x18x64xf32, #tpu.memory_space<vmem>>, %arg2: memref<3x3x64x4xf32, #tpu.memory_space<vmem>>, %arg3: memref<1x4xf32, #tpu.memory_space<vmem>>, %arg4: memref<4x256xf32, #tpu.memory_space<vmem>>, %arg5: memref<1x4x4xf32, #tpu.memory_space<vmem>>) attributes {dimension_semantics = [#tpu.dimension_semantics<parallel>], iteration_bounds = array<i64: 2>, scalar_prefetch = 0 : i64, scratch_operands = 0 : i64, tpu.core_type = #tpu.core_type<tc>, window_params = [{transform_indices = @transform_0, window_bounds = array<i64: 1, 18, 18, 64>}, {pipeline_mode = #tpu.pipeline_mode<synchronous>, transform_indices = @transform_1, window_bounds = array<i64: 3, 3, 64, 4>}, {pipeline_mode = #tpu.pipeline_mode<synchronous>, transform_indices = @transform_2, window_bounds = array<i64: 1, 4>}, {pipeline_mode = #tpu.pipeline_mode<synchronous>, transform_indices = @transform_3, window_bounds = array<i64: 4, 256>}, {transform_indices = @transform_4, window_bounds = array<i64: 1, 4, 4>}]} {
    %c0 = arith.constant 0 : index
    %c0_0 = arith.constant 0 : index
    %c0_1 = arith.constant 0 : index
    %c0_2 = arith.constant 0 : index
    %0 = vector.load %arg1[%c0, %c0_0, %c0_1, %c0_2] : memref<1x18x18x64xf32, #tpu.memory_space<vmem>>, vector<1x18x18x64xf32>
    %1 = vector.shape_cast %0 : vector<1x18x18x64xf32> to vector<18x18x64xf32>
    %cst = arith.constant 0.000000e+00 : f32
    %2 = vector.broadcast %cst : f32 to vector<256x4xf32>
    %3 = vector.extract_strided_slice %1 {offsets = [0, 0, 0], sizes = [16, 16, 64], strides = [1, 1, 1]} : vector<18x18x64xf32> to vector<16x16x64xf32>
    %4 = vector.shape_cast %3 : vector<16x16x64xf32> to vector<256x64xf32>
    %c0_3 = arith.constant 0 : index
    %c0_4 = arith.constant 0 : index
    %c0_5 = arith.constant 0 : index
    %c0_6 = arith.constant 0 : index
    %5 = vector.load %arg2[%c0_3, %c0_4, %c0_5, %c0_6] : memref<3x3x64x4xf32, #tpu.memory_space<vmem>>, vector<1x1x64x4xf32>
    %6 = vector.shape_cast %5 : vector<1x1x64x4xf32> to vector<64x4xf32>
    %cst_7 = arith.constant dense<0.000000e+00> : vector<256x4xf32>
    %7 = tpu.matmul %4, %6, %cst_7 {dimension_numbers = #tpu.dot_dimension_numbers<[1], [0], [0], [1], [0, 0, 1, 1], [], []>} : vector<256x64xf32>, vector<64x4xf32>, vector<256x4xf32> -> vector<256x4xf32>
    %8 = arith.addf %2, %7 : vector<256x4xf32>
    %9 = vector.extract_strided_slice %1 {offsets = [0, 1, 0], sizes = [16, 16, 64], strides = [1, 1, 1]} : vector<18x18x64xf32> to vector<16x16x64xf32>
    %10 = vector.shape_cast %9 : vector<16x16x64xf32> to vector<256x64xf32>
    %c0_8 = arith.constant 0 : index
    %c1 = arith.constant 1 : index
    %c0_9 = arith.constant 0 : index
    %c0_10 = arith.constant 0 : index
    %11 = vector.load %arg2[%c0_8, %c1, %c0_9, %c0_10] : memref<3x3x64x4xf32, #tpu.memory_space<vmem>>, vector<1x1x64x4xf32>
    %12 = vector.shape_cast %11 : vector<1x1x64x4xf32> to vector<64x4xf32>
    %cst_11 = arith.constant dense<0.000000e+00> : vector<256x4xf32>
    %13 = tpu.matmul %10, %12, %cst_11 {dimension_numbers = #tpu.dot_dimension_numbers<[1], [0], [0], [1], [0, 0, 1, 1], [], []>} : vector<256x64xf32>, vector<64x4xf32>, vector<256x4xf32> -> vector<256x4xf32>
    %14 = arith.addf %8, %13 : vector<256x4xf32>
    %15 = vector.extract_strided_slice %1 {offsets = [0, 2, 0], sizes = [16, 16, 64], strides = [1, 1, 1]} : vector<18x18x64xf32> to vector<16x16x64xf32>
    %16 = vector.shape_cast %15 : vector<16x16x64xf32> to vector<256x64xf32>
    %c0_12 = arith.constant 0 : index
    %c2 = arith.constant 2 : index
    %c0_13 = arith.constant 0 : index
    %c0_14 = arith.constant 0 : index
    %17 = vector.load %arg2[%c0_12, %c2, %c0_13, %c0_14] : memref<3x3x64x4xf32, #tpu.memory_space<vmem>>, vector<1x1x64x4xf32>
    %18 = vector.shape_cast %17 : vector<1x1x64x4xf32> to vector<64x4xf32>
    %cst_15 = arith.constant dense<0.000000e+00> : vector<256x4xf32>
    %19 = tpu.matmul %16, %18, %cst_15 {dimension_numbers = #tpu.dot_dimension_numbers<[1], [0], [0], [1], [0, 0, 1, 1], [], []>} : vector<256x64xf32>, vector<64x4xf32>, vector<256x4xf32> -> vector<256x4xf32>
    %20 = arith.addf %14, %19 : vector<256x4xf32>
    %21 = vector.extract_strided_slice %1 {offsets = [1, 0, 0], sizes = [16, 16, 64], strides = [1, 1, 1]} : vector<18x18x64xf32> to vector<16x16x64xf32>
    %22 = vector.shape_cast %21 : vector<16x16x64xf32> to vector<256x64xf32>
    %c1_16 = arith.constant 1 : index
    %c0_17 = arith.constant 0 : index
    %c0_18 = arith.constant 0 : index
    %c0_19 = arith.constant 0 : index
    %23 = vector.load %arg2[%c1_16, %c0_17, %c0_18, %c0_19] : memref<3x3x64x4xf32, #tpu.memory_space<vmem>>, vector<1x1x64x4xf32>
    %24 = vector.shape_cast %23 : vector<1x1x64x4xf32> to vector<64x4xf32>
    %cst_20 = arith.constant dense<0.000000e+00> : vector<256x4xf32>
    %25 = tpu.matmul %22, %24, %cst_20 {dimension_numbers = #tpu.dot_dimension_numbers<[1], [0], [0], [1], [0, 0, 1, 1], [], []>} : vector<256x64xf32>, vector<64x4xf32>, vector<256x4xf32> -> vector<256x4xf32>
    %26 = arith.addf %20, %25 : vector<256x4xf32>
    %27 = vector.extract_strided_slice %1 {offsets = [1, 1, 0], sizes = [16, 16, 64], strides = [1, 1, 1]} : vector<18x18x64xf32> to vector<16x16x64xf32>
    %28 = vector.shape_cast %27 : vector<16x16x64xf32> to vector<256x64xf32>
    %c1_21 = arith.constant 1 : index
    %c1_22 = arith.constant 1 : index
    %c0_23 = arith.constant 0 : index
    %c0_24 = arith.constant 0 : index
    %29 = vector.load %arg2[%c1_21, %c1_22, %c0_23, %c0_24] : memref<3x3x64x4xf32, #tpu.memory_space<vmem>>, vector<1x1x64x4xf32>
    %30 = vector.shape_cast %29 : vector<1x1x64x4xf32> to vector<64x4xf32>
    %cst_25 = arith.constant dense<0.000000e+00> : vector<256x4xf32>
    %31 = tpu.matmul %28, %30, %cst_25 {dimension_numbers = #tpu.dot_dimension_numbers<[1], [0], [0], [1], [0, 0, 1, 1], [], []>} : vector<256x64xf32>, vector<64x4xf32>, vector<256x4xf32> -> vector<256x4xf32>
    %32 = arith.addf %26, %31 : vector<256x4xf32>
    %33 = vector.extract_strided_slice %1 {offsets = [1, 2, 0], sizes = [16, 16, 64], strides = [1, 1, 1]} : vector<18x18x64xf32> to vector<16x16x64xf32>
    %34 = vector.shape_cast %33 : vector<16x16x64xf32> to vector<256x64xf32>
    %c1_26 = arith.constant 1 : index
    %c2_27 = arith.constant 2 : index
    %c0_28 = arith.constant 0 : index
    %c0_29 = arith.constant 0 : index
    %35 = vector.load %arg2[%c1_26, %c2_27, %c0_28, %c0_29] : memref<3x3x64x4xf32, #tpu.memory_space<vmem>>, vector<1x1x64x4xf32>
    %36 = vector.shape_cast %35 : vector<1x1x64x4xf32> to vector<64x4xf32>
    %cst_30 = arith.constant dense<0.000000e+00> : vector<256x4xf32>
    %37 = tpu.matmul %34, %36, %cst_30 {dimension_numbers = #tpu.dot_dimension_numbers<[1], [0], [0], [1], [0, 0, 1, 1], [], []>} : vector<256x64xf32>, vector<64x4xf32>, vector<256x4xf32> -> vector<256x4xf32>
    %38 = arith.addf %32, %37 : vector<256x4xf32>
    %39 = vector.extract_strided_slice %1 {offsets = [2, 0, 0], sizes = [16, 16, 64], strides = [1, 1, 1]} : vector<18x18x64xf32> to vector<16x16x64xf32>
    %40 = vector.shape_cast %39 : vector<16x16x64xf32> to vector<256x64xf32>
    %c2_31 = arith.constant 2 : index
    %c0_32 = arith.constant 0 : index
    %c0_33 = arith.constant 0 : index
    %c0_34 = arith.constant 0 : index
    %41 = vector.load %arg2[%c2_31, %c0_32, %c0_33, %c0_34] : memref<3x3x64x4xf32, #tpu.memory_space<vmem>>, vector<1x1x64x4xf32>
    %42 = vector.shape_cast %41 : vector<1x1x64x4xf32> to vector<64x4xf32>
    %cst_35 = arith.constant dense<0.000000e+00> : vector<256x4xf32>
    %43 = tpu.matmul %40, %42, %cst_35 {dimension_numbers = #tpu.dot_dimension_numbers<[1], [0], [0], [1], [0, 0, 1, 1], [], []>} : vector<256x64xf32>, vector<64x4xf32>, vector<256x4xf32> -> vector<256x4xf32>
    %44 = arith.addf %38, %43 : vector<256x4xf32>
    %45 = vector.extract_strided_slice %1 {offsets = [2, 1, 0], sizes = [16, 16, 64], strides = [1, 1, 1]} : vector<18x18x64xf32> to vector<16x16x64xf32>
    %46 = vector.shape_cast %45 : vector<16x16x64xf32> to vector<256x64xf32>
    %c2_36 = arith.constant 2 : index
    %c1_37 = arith.constant 1 : index
    %c0_38 = arith.constant 0 : index
    %c0_39 = arith.constant 0 : index
    %47 = vector.load %arg2[%c2_36, %c1_37, %c0_38, %c0_39] : memref<3x3x64x4xf32, #tpu.memory_space<vmem>>, vector<1x1x64x4xf32>
    %48 = vector.shape_cast %47 : vector<1x1x64x4xf32> to vector<64x4xf32>
    %cst_40 = arith.constant dense<0.000000e+00> : vector<256x4xf32>
    %49 = tpu.matmul %46, %48, %cst_40 {dimension_numbers = #tpu.dot_dimension_numbers<[1], [0], [0], [1], [0, 0, 1, 1], [], []>} : vector<256x64xf32>, vector<64x4xf32>, vector<256x4xf32> -> vector<256x4xf32>
    %50 = arith.addf %44, %49 : vector<256x4xf32>
    %51 = vector.extract_strided_slice %1 {offsets = [2, 2, 0], sizes = [16, 16, 64], strides = [1, 1, 1]} : vector<18x18x64xf32> to vector<16x16x64xf32>
    %52 = vector.shape_cast %51 : vector<16x16x64xf32> to vector<256x64xf32>
    %c2_41 = arith.constant 2 : index
    %c2_42 = arith.constant 2 : index
    %c0_43 = arith.constant 0 : index
    %c0_44 = arith.constant 0 : index
    %53 = vector.load %arg2[%c2_41, %c2_42, %c0_43, %c0_44] : memref<3x3x64x4xf32, #tpu.memory_space<vmem>>, vector<1x1x64x4xf32>
    %54 = vector.shape_cast %53 : vector<1x1x64x4xf32> to vector<64x4xf32>
    %cst_45 = arith.constant dense<0.000000e+00> : vector<256x4xf32>
    %55 = tpu.matmul %52, %54, %cst_45 {dimension_numbers = #tpu.dot_dimension_numbers<[1], [0], [0], [1], [0, 0, 1, 1], [], []>} : vector<256x64xf32>, vector<64x4xf32>, vector<256x4xf32> -> vector<256x4xf32>
    %56 = arith.addf %50, %55 : vector<256x4xf32>
    %c0_46 = arith.constant 0 : index
    %c0_47 = arith.constant 0 : index
    %57 = vector.load %arg3[%c0_46, %c0_47] : memref<1x4xf32, #tpu.memory_space<vmem>>, vector<1x4xf32>
    %58 = vector.broadcast %57 : vector<1x4xf32> to vector<256x4xf32>
    %59 = arith.addf %56, %58 : vector<256x4xf32>
    %cst_48 = arith.constant 0.000000e+00 : f32
    %60 = vector.broadcast %cst_48 : f32 to vector<256x4xf32>
    %61 = arith.maximumf %59, %60 : vector<256x4xf32>
    %c0_49 = arith.constant 0 : index
    %c0_50 = arith.constant 0 : index
    %62 = vector.load %arg4[%c0_49, %c0_50] : memref<4x256xf32, #tpu.memory_space<vmem>>, vector<4x256xf32>
    %cst_51 = arith.constant dense<0.000000e+00> : vector<4x4xf32>
    %63 = tpu.matmul %62, %61, %cst_51 {dimension_numbers = #tpu.dot_dimension_numbers<[1], [0], [0], [1], [0, 0, 1, 1], [], []>} : vector<4x256xf32>, vector<256x4xf32>, vector<4x4xf32> -> vector<4x4xf32>
    %c0_52 = arith.constant 0 : index
    %c0_53 = arith.constant 0 : index
    %c0_54 = arith.constant 0 : index
    %64 = vector.load %arg5[%c0_52, %c0_53, %c0_54] : memref<1x4x4xf32, #tpu.memory_space<vmem>>, vector<1x4x4xf32>
    %65 = vector.shape_cast %64 : vector<1x4x4xf32> to vector<4x4xf32>
    %66 = vector.shape_cast %63 : vector<4x4xf32> to vector<1x4x4xf32>
    tpu.vector_store %arg5[%c0_52, %c0_53, %c0_54], %66 {strides = array<i32>} : memref<1x4x4xf32, #tpu.memory_space<vmem>>, vector<1x4x4xf32>,
    return
  }
  func.func @transform_0(%arg0: i32) -> (i32, i32, i32, i32) {
    %c0_i32 = arith.constant 0 : i32
    %c0_i32_0 = arith.constant 0 : i32
    %c0_i32_1 = arith.constant 0 : i32
    %c0_i32_2 = arith.constant 0 : i32
    return %arg0, %c0_i32, %c0_i32_0, %c0_i32_1 : i32, i32, i32, i32
  }
  func.func @transform_1(%arg0: i32) -> (i32, i32, i32, i32) {
    %c0_i32 = arith.constant 0 : i32
    %c0_i32_0 = arith.constant 0 : i32
    %c0_i32_1 = arith.constant 0 : i32
    %c0_i32_2 = arith.constant 0 : i32
    %c0_i32_3 = arith.constant 0 : i32
    return %c0_i32, %c0_i32_0, %c0_i32_1, %c0_i32_2 : i32, i32, i32, i32
  }
  func.func @transform_2(%arg0: i32) -> (i32, i32) {
    %c0_i32 = arith.constant 0 : i32
    %c0_i32_0 = arith.constant 0 : i32
    %c0_i32_1 = arith.constant 0 : i32
    return %c0_i32, %c0_i32_0 : i32, i32
  }
  func.func @transform_3(%arg0: i32) -> (i32, i32) {
    %c0_i32 = arith.constant 0 : i32
    %c0_i32_0 = arith.constant 0 : i32
    %c0_i32_1 = arith.constant 0 : i32
    return %c0_i32, %c0_i32_0 : i32, i32
  }
  func.func @transform_4(%arg0: i32) -> (i32, i32, i32) {
    %c0_i32 = arith.constant 0 : i32
    %c0_i32_0 = arith.constant 0 : i32
    %c0_i32_1 = arith.constant 0 : i32
    return %arg0, %c0_i32, %c0_i32_0 : i32, i32, i32
  }
}

</mosaic_0001>

<bundles_post_ra>
// kernel: tpu_custom_call.1
= control target key start
LH: loop header
LB: loop body
LE: loop exit
PB: predicated region body
PF: predicated region fallthrough
CT: control target
= control target key end

     0   :  { %9 = vsyncpa [#allocation3], 0  ;;  %s6631_s0 = inlined_call_operand.vmem [shape: f32[2,18,18,64], index: 0, kind: input, shape index: {}]   ;;  %s6632_s1 = inlined_call_operand.vmem [shape: f32[3,3,64,4], index: 1, kind: input, shape index: {}]   ;;  %s6633_s2 = inlined_call_operand.vmem [shape: f32[1,4], index: 2, kind: input, shape index: {}]   ;;  %s6634_s3 = inlined_call_operand.vmem [shape: f32[4,256], index: 3, kind: input, shape index: {}]   ;;  %s6635_s4 = inlined_call_operand.hbm [shape: f32[2,4,4], index: 4, kind: output, shape index: {}]  }
   0x1   :  { %11 = vsyncpa [#allocation3 + $0x1], 0  ;;  %s4747_s15 = smov 0   ;;  %s4749_s16 = smov 0  }
   0x2   :  { %s4751_s17 = smov 0   ;;  %s4753_s18 = smov 0  }
   0x3 LB: > { %s4768_s19 = sadd.s32 4294967295, %s4719_s18   ;;  %s3252_s20 = sadd.s32 4294967294, %s4719_s18   ;;  %s4719_s18 = sphi %s4753_s18, %s6910_s18   ;;  %s4715_s17 = sphi %s4751_s17, %s6909_s17   ;;  %s4711_s16 = sphi %s4749_s16, %s6908_s16   ;;  %s4707_s15 = sphi %s4747_s15, %s6907_s15  }
   0x4   : > { %s4772_s21 = sadd.s32 1, %s4719_s18   ;;  %s113_s22 = sadd.s32 1, %s4715_s17 }
   0x5   : > { %s110_s23 = ssub.s32 %s4719_s18, %s4772_s21  ;;  %p123_p0 = scmp.ne.s32.totalorder %s4715_s17, %s4711_s16 }
   0x6   : > { %p111_p1 = scmp.eq.s32.totalorder %s110_s23, 0  ;;  %p124_p2 = scmp.eq.s32.totalorder %s4768_s19, 1 }
   0x7   : > { %p129_p3 = scmp.ne.s32.totalorder %s4711_s16, %s4707_s15  ;;  %p130_p4 = scmp.eq.s32.totalorder %s3252_s20, 1 }
   0x8   : > { %s4783_s24 = scalar_select %p111_p1, %s4715_s17, %s113_s22  }
   0x9   : > { %p4785_p5 = por %p124_p2, %p123_p0  ;;  %p4789_p6 = por %p130_p4, %p129_p3 }
   0xa   : > { %p3255_p7 = scmp.ge.s32.totalorder %s4719_s18, 1  ;;  %p165_p8 = scmp.lt.s32.totalorder %s4719_s18, 3 }
   0xc   : > { %p166_p9 = pnand %p3255_p7, %p165_p8 }
   0xe   : > { %169 = sbr.rel (%p166_p9) target bundleno = 766 (0x2fe), region = 36 }
  0x13   : > { %v3265_v0 = vld [vmem:[%s6632_s1 + $0x78] sm:$0xff]  ;;  %v3264_v1 = vld [vmem:[%s6632_s1 + $0x70] sm:$0xff]  ;;  %p191_p10 = scmp.lt.s32.totalorder %s4768_s19, 1  ;;  %v3263_v2 = vld [vmem:[%s6632_s1 + $0x68] sm:$0xff]  ;;  %vm306_vm0 = vcmask 1046528   ;;  %vm396_vm1 = vcmask 523264  }
  0x14   : > { %4010 = vmatprep.subr.mxu0 %v3265_v0  ;;  %4586 = vmatprep.subr.mxu1 %v3265_v0  ;;  %v3262_v3 = vld [vmem:[%s6632_s1 + $0x60] sm:$0xff]  ;;  %v3261_v4 = vld [vmem:[%s6632_s1 + $0x58] sm:$0xff]  ;;  %v3260_v8 = vld [vmem:[%s6632_s1 + $0x50] sm:$0xff]  ;;  %vm975_vm2 = vcmask 1045504   ;;  %s188_s8 = sand.u32 1, %s4711_s16   ;;  %vm3177_vm3 = vcmask 27648  }
  0x15   : > { %4011 = vmatpush3.msra.mxu0 %v3265_v0  ;;  %4594 = vmatpush3.msra.mxu1 %v3265_v0  ;;  %s192_s7 = scalar_select %p191_p10, %s4768_s19, 1  ;;  %v3259_v11 = vld [vmem:[%s6632_s1 + $0x48] sm:$0xff]  ;;  %v3258_v22 = vld [vmem:[%s6632_s1 + $0x40] sm:$0xff]  ;;  %v257_v43 = vld [vmem:[%s6632_s1 + $0x38] sm:$0xff] }
  0x16   : > { %4012 = vmatprep.subr.mxu0 %v3264_v1  ;;  %4587 = vmatprep.subr.mxu1 %v3264_v1  ;;  %v3337_v50 = vld [vmem:[%s6632_s1 + $0xb8] sm:$0xff]  ;;  %v256_v61 = vld [vmem:[%s6632_s1 + $0x30] sm:$0xff]  ;;  %s3256_s9 = sshll.u32 %s188_s8, 2  ;;  %s3180_s23 = scalar_lea.sflag [#allocation3], %s188_s8 }
  0x17   : > { %4013 = vmatpush3.msra.mxu0 %v3264_v1  ;;  %4595 = vmatpush3.msra.mxu1 %v3264_v1  ;;  %s4602_s10 = smul.u32 432, %s192_s7  ;;  %s190_s11 = scalar_lea.vmem [#allocation2], %s3256_s9 }
  0x18   : > { %4014 = vmatprep.subr.mxu0 %v3263_v2  ;;  %4588 = vmatprep.subr.mxu1 %v3263_v2  ;;  %s3193_s12 = sshll.u32 %s190_s11, 4  ;;  %s4721_s28 = smov [#allocation2]   ;;  %s3194_s12 = int_to_ptr.vmem [resolvable:$true] %s3193_s12 }
  0x19   : > { %4015 = vmatpush3.msra.mxu0 %v3263_v2  ;;  %4596 = vmatpush3.msra.mxu1 %v3263_v2  ;;  %s4815_s20 = scalar_lea.vmem %s6631_s0, %s4602_s10  ;;  %s3612_s10 = sshll.u32 %s4768_s19, 6 }
  0x1a   : > { %4016 = vmatprep.subr.mxu0 %v3262_v3  ;;  %4589 = vmatprep.subr.mxu1 %v3262_v3  ;;  %v4818_v5 = vld [vmem:[%s4815_s20] sm:$0xff]  ;;  %v4821_v6 = vld [vmem:[%s4815_s20 + $0x8] sm:$0xff]  ;;  %v4824_v7 = vld [vmem:[%s4815_s20 + $0xd8] sm:$0xff]  ;;  %s3191_s22 = scalar_lea.hbm %s6635_s4, %s3612_s10  ;;  %s4659_s27 = scalar_lea.vmem %s3194_s12, 64 }
  0x1b   : > { %4017 = vmatpush3.msra.mxu0 %v3262_v3  ;;  %4597 = vmatpush3.msra.mxu1 %v3262_v3  ;;  %v4830_v9 = vld [vmem:[%s4815_s20 + $0xe0] sm:$0xff]  ;;  %v4833_v10 = vld [vmem:[%s4815_s20 + $0x10] sm:$0x3]  ;;  %v307_v12 = vrot.slane %v4818_v5, 1  ;;  %v308_v13 = vrot.slane %v4821_v6, 1  ;;  %v4844_v15 = vld [vmem:[%s4815_s20 + $0x18] sm:$0xff]  ;;  %p4660_p11 = scmp.ne.s32.totalorder %s3194_s12, %s4659_s27 }
  0x1c   : > { %4018 = vmatprep.subr.mxu0 %v3261_v4  ;;  %4590 = vmatprep.subr.mxu1 %v3261_v4  ;;  %v4841_v14 = vld [vmem:[%s4815_s20 + $0xe8] sm:$0x3]  ;;  %v352_v16 = vrot.slane %v4824_v7, 1  ;;  %v353_v17 = vrot.slane %v4830_v9, 1  ;;  %v310_v18 = vrot.slane %v4833_v10, 1  ;;  %v4850_v19 = vld [vmem:[%s4815_s20 + $0x20] sm:$0xff] }
  0x1d   : > { %4019 = vmatpush3.msra.mxu0 %v3261_v4  ;;  %4598 = vmatpush3.msra.mxu1 %v3261_v4  ;;  %v4853_v20 = vld [vmem:[%s4815_s20 + $0xf0] sm:$0xff]  ;;  %v4856_v21 = vld [vmem:[%s4815_s20 + $0xf8] sm:$0xff]  ;;  %v355_v23 = vrot.slane %v4841_v14, 1  ;;  %v312_v24 = vrot.slane %v4844_v15, 1  ;;  %v313_v25 = vrot.slane %v4850_v19, 1  ;;  %v4879_v32 = vld [vmem:[%s4815_s20 + $0x108] sm:$0xff]  ;;  %v309_v34 = vsel %vm306_vm0, %v307_v12, %v308_v13  ;;  %p4661_p12 = pnand %p4660_p11, %p4785_p5 }
  0x1e   : > { %4020 = vmatprep.subr.mxu0 %v3260_v8  ;;  %4591 = vmatprep.subr.mxu1 %v3260_v8  ;;  %v4865_v26 = vld [vmem:[%s4815_s20 + $0x28] sm:$0x3]  ;;  %v357_v27 = vrot.slane %v4853_v20, 1  ;;  %v358_v28 = vrot.slane %v4856_v21, 1  ;;  %v4870_v29 = vld [vmem:[%s4815_s20 + $0x100] sm:$0x3]  ;;  %v4886_v35 = vsel %vm306_vm0, %v352_v16, %v353_v17  ;;  %v311_v36 = vsel %vm306_vm0, %v308_v13, %v310_v18 }
  0x1f   : > { %4021 = vmatpush3.msra.mxu0 %v3260_v8  ;;  %4599 = vmatpush3.msra.mxu1 %v3260_v8  ;;  %v4873_v30 = vld [vmem:[%s4815_s20 + $0x30] sm:$0xff]  ;;  %v4876_v31 = vld [vmem:[%s4815_s20 + $0x38] sm:$0xff]  ;;  %6721 = vst [vmem:[#allocation5_spill] sm:$0xff] %v4886_v35  ;;  %v315_v37 = vrot.slane %v4865_v26, 1  ;;  %v4891_v38 = vsel %vm306_vm0, %v353_v17, %v355_v23  ;;  %v360_v39 = vrot.slane %v4870_v29, 1  ;;  %v4903_v44 = vsel %vm306_vm0, %v312_v24, %v313_v25  ;;  %v4914_v49 = vld [vmem:[%s4815_s20 + $0x48] sm:$0xff]  ;;  %p4662_p13 = pneg %p4661_p12 }
  0x20   : > { %4022 = vmatprep.subr.mxu0 %v3259_v11  ;;  %4592 = vmatprep.subr.mxu1 %v3259_v11  ;;  %v4882_v33 = vld [vmem:[%s4815_s20 + $0x110] sm:$0xff]  ;;  %6722 = vst [vmem:[#allocation6_spill] sm:$0xff] %v4891_v38  ;;  %v317_v40 = vrot.slane %v4873_v30, 1  ;;  %v318_v41 = vrot.slane %v4876_v31, 1  ;;  %v4897_v42 = vld [vmem:[%s4815_s20 + $0x40] sm:$0x3]  ;;  %v4906_v45 = vsel %vm306_vm0, %v357_v27, %v358_v28 }
  0x21   : > { %4023 = vmatpush3.msra.mxu0 %v3259_v11  ;;  %4600 = vmatpush3.msra.mxu1 %v3259_v11  ;;  %6723 = vst [vmem:[#allocation7_spill] sm:$0xff] %v4903_v44  ;;  %6724 = vst [vmem:[#allocation8_spill] sm:$0xff] %v4906_v45  ;;  %v362_v46 = vrot.slane %v4879_v32, 1  ;;  %v363_v47 = vrot.slane %v4882_v33, 1  ;;  %v4911_v48 = vld [vmem:[%s4815_s20 + $0x118] sm:$0x3]  ;;  %v4935_v54 = vsel %vm306_vm0, %v313_v25, %v315_v37 }
  0x22   : > { %4024 = vmatprep.subr.mxu0 %v3258_v22  ;;  %4593 = vmatprep.subr.mxu1 %v3258_v22  ;;  %v4923_v51 = vld [vmem:[%s4815_s20 + $0x50] sm:$0xff]  ;;  %v4926_v52 = vld [vmem:[%s4815_s20 + $0x120] sm:$0xff]  ;;  %v4929_v53 = vld [vmem:[%s4815_s20 + $0x128] sm:$0xff]  ;;  %6725 = vst [vmem:[#allocation9_spill] sm:$0xff] %v4935_v54  ;;  %v320_v55 = vrot.slane %v4897_v42, 1  ;;  %v4943_v56 = vsel %vm306_vm0, %v358_v28, %v360_v39  ;;  %v4946_v57 = vsel %vm306_vm0, %v317_v40, %v318_v41  ;;  %v365_v58 = vrot.slane %v4911_v48, 1 }
  0x23   : > { %4025 = vmatpush3.msra.mxu0 %v3258_v22  ;;  %4601 = vmatpush3.msra.mxu1 %v3258_v22  ;;  %6726 = vst [vmem:[#allocation10_spill] sm:$0xff] %v4943_v56  ;;  %6727 = vst [vmem:[#allocation11_spill] sm:$0xff] %v4946_v57  ;;  %v322_v59 = vrot.slane %v4914_v49, 1  ;;  %v4951_v60 = vld [vmem:[%s4815_s20 + $0x58] sm:$0x3]  ;;  %v4957_v62 = vld [vmem:[%s4815_s20 + $0x60] sm:$0xff]  ;;  %v4960_v63 = vsel %vm306_vm0, %v362_v46, %v363_v47 }
  0x24   : > { %4026 = vmatprep.mubr.msk.f32.mxu0 %vm396_vm1, %v309_v34  ;;  %4053 = vmatprep.mubr.msk.f32.mxu1 %vm396_vm1, %v4886_v35  ;;  %6728 = vst [vmem:[#allocation12_spill] sm:$0xff] %v4960_v63  ;;  %v323_v0 = vrot.slane %v4923_v51, 1  ;;  %v367_v1 = vrot.slane %v4926_v52, 1  ;;  %v368_v2 = vrot.slane %v4929_v53, 1  ;;  %v4966_v3 = vld [vmem:[%s4815_s20 + $0x130] sm:$0x3]  ;;  %v4985_v13 = vsel %vm306_vm0, %v318_v41, %v320_v55 }
  0x25   : > { %4027 = vmatmul.mubr.msk.f32.vlgmr.msra.gmra.mxu0 %vm396_vm1, %v311_v36  ;;  %4054 = vmatmul.mubr.msk.f32.vlgmr.msra.gmra.mxu1 %vm396_vm1, %v4891_v38  ;;  %v4969_v4 = vld [vmem:[%s4815_s20 + $0x68] sm:$0xff]  ;;  %v4972_v8 = vld [vmem:[%s4815_s20 + $0x138] sm:$0xff]  ;;  %v4975_v11 = vld [vmem:[%s4815_s20 + $0x140] sm:$0xff]  ;;  %6729 = vst [vmem:[#allocation13_spill] sm:$0xff] %v4985_v13  ;;  %v325_v16 = vrot.slane %v4951_v60, 1  ;;  %v4993_v17 = vsel %vm306_vm0, %v363_v47, %v365_v58  ;;  %v370_v18 = vrot.slane %v4966_v3, 1 }
  0x26   : > { %4029 = vmatprep.mubr.msk.f32.mxu0 %vm396_vm1, %v4903_v44  ;;  %4056 = vmatprep.mubr.msk.f32.mxu1 %vm396_vm1, %v4906_v45  ;;  %v3336_v12 = vld [vmem:[%s6632_s1 + $0xb0] sm:$0xff]  ;;  %6730 = vst [vmem:[#allocation14_spill] sm:$0xff] %v4993_v17  ;;  %v327_v22 = vrot.slane %v4957_v62, 1  ;;  %v328_v23 = vrot.slane %v4969_v4, 1  ;;  %v255_v25 = vld [vmem:[%s6632_s1 + $0x28] sm:$0xff]  ;;  %v5005_v27 = vsel %vm306_vm0, %v322_v59, %v323_v0  ;;  %v5008_v28 = vsel %vm306_vm0, %v367_v1, %v368_v2  ;;  %v5016_v39 = vld [vmem:[%s4815_s20 + $0x78] sm:$0xff] }
  0x27   : > { %4074 = vmatprep.subr.mxu1 %v257_v43  ;;  %4138 = vmatprep.subr.mxu0 %v3337_v50  ;;  %v4999_v24 = vld [vmem:[%s4815_s20 + $0x70] sm:$0x3]  ;;  %6731 = vst [vmem:[#allocation15_spill] sm:$0xff] %v5005_v27  ;;  %6732 = vst [vmem:[#allocation16_spill] sm:$0xff] %v5008_v28  ;;  %v372_v34 = vrot.slane %v4972_v8, 1  ;;  %v373_v36 = vrot.slane %v4975_v11, 1  ;;  %v5035_v47 = vsel %vm306_vm0, %v323_v0, %v325_v16 }
  0x28   : > { %4075 = vmatpush3.msra.mxu1 %v257_v43  ;;  %4139 = vmatpush3.msra.mxu0 %v3337_v50  ;;  %v5013_v37 = vld [vmem:[%s4815_s20 + $0x148] sm:$0x3]  ;;  %v5022_v41 = vld [vmem:[%s4815_s20 + $0x80] sm:$0xff]  ;;  %v5025_v43 = vld [vmem:[%s4815_s20 + $0x150] sm:$0xff]  ;;  %6733 = vst [vmem:[#allocation17_spill] sm:$0xff] %v5035_v47  ;;  %v330_v50 = vrot.slane %v4999_v24, 1  ;;  %v5043_v55 = vsel %vm306_vm0, %v368_v2, %v370_v18  ;;  %v5046_v58 = vsel %vm306_vm0, %v327_v22, %v328_v23 }
  0x29   : > { %4030 = vmatmul.mubr.msk.f32.gmra.mxu0 %vm396_vm1, %v4935_v54  ;;  %4057 = vmatmul.mubr.msk.f32.gmra.mxu1 %vm396_vm1, %v4943_v56  ;;  %v3335_v40 = vld [vmem:[%s6632_s1 + $0xa8] sm:$0xff]  ;;  %v5028_v46 = vld [vmem:[%s4815_s20 + $0x158] sm:$0xff]  ;;  %6734 = vst [vmem:[#allocation18_spill] sm:$0xff] %v5043_v55  ;;  %6735 = vst [vmem:[#allocation19_spill] sm:$0xff] %v5046_v58  ;;  %v375_v59 = vrot.slane %v5013_v37, 1  ;;  %v5054_v1 = vsel %vm306_vm0, %v372_v34, %v373_v36  ;;  %v377_v16 = vrot.slane %v5025_v43, 1 }
  0x2a   : > { %4032 = vmatprep.mubr.msk.f32.mxu0 %vm396_vm1, %v4946_v57  ;;  %4059 = vmatprep.mubr.msk.f32.mxu1 %vm396_vm1, %v4960_v63  ;;  %v5051_v0 = vld [vmem:[%s4815_s20 + $0x88] sm:$0x3]  ;;  %6736 = vst [vmem:[#allocation20_spill] sm:$0xff] %v5054_v1  ;;  %v254_v2 = vld [vmem:[%s6632_s1 + $0x20] sm:$0xff]  ;;  %v378_v18 = vrot.slane %v5028_v46, 1  ;;  %v5069_v34 = vld [vmem:[%s4815_s20 + $0x98] sm:$0xff] }
  0x2b   : > { %4076 = vmatprep.subr.mxu1 %v256_v61  ;;  %4140 = vmatprep.subr.mxu0 %v3336_v12  ;;  %v5063_v22 = vld [vmem:[%s4815_s20 + $0x160] sm:$0x3]  ;;  %v5079_v63 = vld [vmem:[%s4815_s20 + $0x168] sm:$0xff]  ;;  %v5092_v56 = vsel %vm306_vm0, %v373_v36, %v375_v59  ;;  %v253_v38 = vld [vmem:[%s6632_s1 + $0x18] sm:$0xff]  ;;  %v338_v36 = vrot.slane %v5069_v34, 1  ;;  %s4663_s29 = sshll.u32 %s4721_s28, 4  ;;  %s4664_s29 = int_to_ptr.vmem [resolvable:$false] %s4663_s29 }
  0x2c   : > { %4077 = vmatpush3.msra.mxu1 %v256_v61  ;;  %4141 = vmatpush3.msra.mxu0 %v3336_v12  ;;  %v332_v61 = vrot.slane %v5016_v39, 1  ;;  %v333_v12 = vrot.slane %v5022_v41, 1  ;;  %6738 = vst [vmem:[#allocation22_spill] sm:$0xff] %v5092_v56  ;;  %v380_v45 = vrot.slane %v5063_v22, 1  ;;  %v5108_v59 = vld [vmem:[%s4815_s20 + $0xa0] sm:$0x3]  ;;  %p4666_p0 = scmp.lt.s32.totalorder %s3194_s12, %s4664_s29 }
  0x2d   : > { %4033 = vmatmul.mubr.msk.f32.gmra.mxu0 %vm396_vm1, %v4985_v13  ;;  %4060 = vmatmul.mubr.msk.f32.gmra.mxu1 %vm396_vm1, %v4993_v17  ;;  %v3334_v17 = vld [vmem:[%s6632_s1 + $0xa0] sm:$0xff]  ;;  %v340_v13 = vrot.slane %v5108_v59, 1  ;;  %v5158_v57 = vld [vmem:[%s4815_s20 + $0xc8] sm:$0xff]  ;;  %s4665_s19 = scalar_lea.vmem %s4664_s29, 128 }
  0x2e   : > { %4035 = vmatprep.mubr.msk.f32.mxu0 %vm396_vm1, %v5005_v27  ;;  %4062 = vmatprep.mubr.msk.f32.mxu1 %vm396_vm1, %v5008_v28  ;;  %v5066_v28 = vld [vmem:[%s4815_s20 + $0x90] sm:$0xff]  ;;  %v5100_v35 = vsel %vm306_vm0, %v332_v61, %v333_v12  ;;  %v5116_v27 = vld [vmem:[%s4815_s20 + $0xa8] sm:$0xff]  ;;  %v348_v44 = vrot.slane %v5158_v57, 1  ;;  %p4667_p1 = scmp.lt.s32.totalorder %s4665_s19, %s4659_s27 }
  0x2f   : > { %4078 = vmatprep.subr.mxu1 %v255_v25  ;;  %4142 = vmatprep.subr.mxu0 %v3335_v40  ;;  %6739 = vst [vmem:[#allocation23_spill] sm:$0xff] %v5100_v35  ;;  %v5119_v61 = vld [vmem:[%s4815_s20 + $0xb0] sm:$0xff] }
  0x30   : > { %4079 = vmatpush3.msra.mxu1 %v255_v25  ;;  %4143 = vmatpush3.msra.mxu0 %v3335_v40  ;;  %v5082_v25 = vld [vmem:[%s4815_s20 + $0x170] sm:$0xff]  ;;  %v5089_v40 = vsel %vm306_vm0, %v328_v23, %v330_v50  ;;  %v5103_v23 = vsel %vm306_vm0, %v377_v16, %v378_v18  ;;  %v337_v50 = vrot.slane %v5066_v28, 1  ;;  %v3333_v16 = vld [vmem:[%s6632_s1 + $0x98] sm:$0xff]  ;;  %p4668_p2 = por %p4667_p1, %p4666_p0 }
  0x31   : > { %4036 = vmatmul.mubr.msk.f32.gmra.mxu0 %vm396_vm1, %v5035_v47  ;;  %4063 = vmatmul.mubr.msk.f32.gmra.mxu1 %vm396_vm1, %v5043_v55  ;;  %6737 = vst [vmem:[#allocation21_spill] sm:$0xff] %v5089_v40  ;;  %v335_v55 = vrot.slane %v5051_v0, 1  ;;  %6740 = vst [vmem:[#allocation24_spill] sm:$0xff] %v5103_v23  ;;  %v383_v47 = vrot.slane %v5082_v25, 1 }
  0x32   : > { %4038 = vmatprep.mubr.msk.f32.mxu0 %vm396_vm1, %v5046_v58  ;;  %4065 = vmatprep.mubr.msk.f32.mxu1 %vm396_vm1, %v5054_v1  ;;  %v5111_v1 = vld [vmem:[%s4815_s20 + $0x178] sm:$0x3]  ;;  %v382_v58 = vrot.slane %v5079_v63, 1  ;;  %p4669_p3 = pnand %p4668_p2, %p4662_p13 }
  0x33   : > { %4080 = vmatprep.subr.mxu1 %v254_v2  ;;  %4144 = vmatprep.subr.mxu0 %v3334_v17 }
  0x34   : > { %4081 = vmatpush3.msra.mxu1 %v254_v2  ;;  %4145 = vmatpush3.msra.mxu0 %v3334_v17  ;;  %v5133_v17 = vsel %vm306_vm0, %v333_v12, %v335_v55  ;;  %v5136_v2 = vsel %vm306_vm0, %v378_v18, %v380_v45  ;;  %v343_v55 = vrot.slane %v5119_v61, 1  ;;  %v5149_v12 = vld [vmem:[%s4815_s20 + $0xb8] sm:$0x3]  ;;  %v5152_v45 = vsel %vm306_vm0, %v382_v58, %v383_v47  ;;  %v5155_v18 = vld [vmem:[%s4815_s20 + $0xc0] sm:$0xff] }
  0x35   : > { %4039 = vmatmul.mubr.msk.f32.gmra.mxu0 %vm396_vm1, %v5089_v40  ;;  %4066 = vmatmul.mubr.msk.f32.gmra.mxu1 %vm396_vm1, %v5092_v56  ;;  %6741 = vst [vmem:[#allocation25_spill] sm:$0xff] %v5133_v17  ;;  %6742 = vst [vmem:[#allocation26_spill] sm:$0xff] %v5136_v2  ;;  %v385_v40 = vrot.slane %v5111_v1, 1  ;;  %v252_v56 = vld [vmem:[%s6632_s1 + $0x10] sm:$0xff]  ;;  %v5173_v58 = vsel %vm306_vm0, %v338_v36, %v340_v13  ;;  %v347_v54 = vrot.slane %v5155_v18, 1  ;;  %v250_v13 = vld [vmem:[%s6632_s1] sm:$0xff] }
  0x36   : > { %4041 = vmatprep.mubr.msk.f32.mxu0 %vm396_vm1, %v5100_v35  ;;  %4068 = vmatprep.mubr.msk.f32.mxu1 %vm396_vm1, %v5103_v23  ;;  %v5144_v35 = vsel %vm306_vm0, %v337_v50, %v338_v36  ;;  %v342_v23 = vrot.slane %v5116_v27, 1  ;;  %6744 = vst [vmem:[#allocation28_spill] sm:$0xff] %v5152_v45  ;;  %v251_v50 = vld [vmem:[%s6632_s1 + $0x8] sm:$0xff]  ;;  %v976_v36 = vrot.slane %v4818_v5, 2 }
  0x37   : > { %4082 = vmatprep.subr.mxu1 %v253_v38  ;;  %6743 = vst [vmem:[#allocation27_spill] sm:$0xff] %v5144_v35  ;;  %4146 = vmatprep.subr.mxu0 %v3333_v16 }
  0x38   : > { %4083 = vmatpush3.msra.mxu1 %v253_v38  ;;  %4147 = vmatpush3.msra.mxu0 %v3333_v16  ;;  %v3332_v38 = vld [vmem:[%s6632_s1 + $0x90] sm:$0xff]  ;;  %v5176_v16 = vsel %vm306_vm0, %v383_v47, %v385_v40  ;;  %v5205_v40 = vsel %vm306_vm0, %v347_v54, %v348_v44  ;;  %v979_v54 = vrot.slane %v4833_v10, 2 }
  0x39   : > { %4042 = vmatmul.mubr.msk.f32.gmra.mxu0 %vm396_vm1, %v5133_v17  ;;  %4069 = vmatmul.mubr.msk.f32.gmra.mxu1 %vm396_vm1, %v5136_v2  ;;  %6745 = vst [vmem:[#allocation29_spill] sm:$0xff] %v5176_v16  ;;  %v345_v2 = vrot.slane %v5149_v12, 1  ;;  %v5182_v17 = vsel %vm306_vm0, %v342_v23, %v343_v55  ;;  %v3331_v23 = vld [vmem:[%s6632_s1 + $0x88] sm:$0xff] }
  0x3a   : > { %4084 = vmatprep.subr.mxu1 %v252_v56  ;;  %4044 = vmatprep.mubr.msk.f32.mxu0 %vm396_vm1, %v5144_v35  ;;  %v5187_v35 = vld [vmem:[%s4815_s20 + $0xd0] sm:$0x3] }
  0x3b   : > { %4071 = vmatprep.mubr.msk.f32.mxu1 %vm396_vm1, %v5152_v45  ;;  %4085 = vmatpush3.msra.mxu1 %v252_v56  ;;  %v5199_v56 = vsel %vm306_vm0, %v343_v55, %v345_v2  ;;  %v350_v47 = vrot.slane %v5187_v35, 1  ;;  %v977_v2 = vrot.slane %v4821_v6, 2  ;;  %v3377_v55 = vld [vmem:[%s6632_s1 + $0xf8] sm:$0xff] }
  0x3c   : > { %4086 = vmatprep.subr.mxu1 %v251_v50  ;;  %4148 = vmatprep.subr.mxu0 %v3332_v38 }
  0x3d   : > { %4045 = vmatmul.mubr.msk.f32.gmra.mxu0 %vm396_vm1, %v5173_v58  ;;  %4072 = vmatmul.mubr.msk.f32.gmra.mxu1 %vm396_vm1, %v5176_v16  ;;  %v978_v10 = vsel %vm975_vm2, %v976_v36, %v977_v2  ;;  %v987_v16 = vrot.slane %v4876_v31, 2 }
  0x3e   : > { %4087 = vmatpush3.msra.mxu1 %v251_v50  ;;  %4047 = vmatprep.mubr.msk.f32.mxu0 %vm396_vm1, %v5182_v17  ;;  %v3330_v50 = vld [vmem:[%s6632_s1 + $0x80] sm:$0xff] }
  0x3f   : > { %4088 = vmatprep.subr.mxu1 %v250_v13  ;;  %4090 = vmatprep.mubr.msk.f32.mxu1 %vm396_vm1, %v4818_v5  ;;  %v5225_v5 = vsel %vm306_vm0, %v348_v44, %v350_v47  ;;  %v3417_v44 = vld [vmem:[%s6632_s1 + $0x138] sm:$0xff]  ;;  %v980_v47 = vsel %vm975_vm2, %v977_v2, %v979_v54  ;;  %v3375_v2 = vld [vmem:[%s6632_s1 + $0xe8] sm:$0xff] }
  0x40   : > { %4089 = vmatpush3.msra.mxu1 %v250_v13  ;;  %4149 = vmatpush3.msra.mxu0 %v3332_v38  ;;  %v981_v38 = vrot.slane %v4844_v15, 2  ;;  %v3376_v13 = vld [vmem:[%s6632_s1 + $0xf0] sm:$0xff] }
  0x41   : > { %4048 = vmatmul.mubr.msk.f32.gmra.mxu0 %vm396_vm1, %v5199_v56  ;;  %4091 = vmatmul.mubr.msk.f32.vlgmr.msra.gmra.mxu1 %vm396_vm1, %v4821_v6  ;;  %v982_v6 = vrot.slane %v4850_v19, 2 }
  0x42   : > { %4050 = vmatprep.mubr.msk.f32.mxu0 %vm396_vm1, %v5205_v40  ;;  %4093 = vmatprep.mubr.msk.f32.mxu1 %vm396_vm1, %v4844_v15 }
  0x43   : > { %4150 = vmatprep.subr.mxu0 %v3331_v23  ;;  %4202 = vmatprep.subr.mxu1 %v3377_v55  ;;  %v5249_v36 = vsel %vm975_vm2, %v981_v38, %v982_v6 }
  0x44   : > { %4151 = vmatpush3.msra.mxu0 %v3331_v23  ;;  %4203 = vmatpush3.msra.mxu1 %v3377_v55  ;;  %v984_v23 = vrot.slane %v4865_v26, 2  ;;  %v986_v55 = vrot.slane %v4873_v30, 2  ;;  %v3416_v26 = vld [vmem:[%s6632_s1 + $0x130] sm:$0xff] }
  0x45   : > { %4051 = vmatmul.mubr.msk.f32.gmra.mxu0 %vm396_vm1, %v5225_v5  ;;  %4094 = vmatmul.mubr.msk.f32.gmra.mxu1 %vm396_vm1, %v4850_v19 }
  0x46   : > { %4152 = vmatprep.subr.mxu0 %v3330_v50  ;;  %4096 = vmatprep.mubr.msk.f32.mxu1 %vm396_vm1, %v4873_v30  ;;  %v5267_v54 = vsel %vm975_vm2, %v982_v6, %v984_v23  ;;  %v5271_v38 = vsel %vm975_vm2, %v986_v55, %v987_v16  ;;  %v3415_v6 = vld [vmem:[%s6632_s1 + $0x128] sm:$0xff]  ;;  %v996_v55 = vrot.slane %v4957_v62, 2 }
  0x47   : > { %4153 = vmatpush3.msra.mxu0 %v3330_v50  ;;  %4154 = vmatprep.mubr.msk.f32.mxu0 %vm396_vm1, %v978_v10  ;;  %6746 = vst [vmem:[#allocation30_spill] sm:$0xff] %v5267_v54  ;;  %v989_v50 = vrot.slane %v4897_v42, 2  ;;  %v991_v10 = vrot.slane %v4914_v49, 2  ;;  %v3374_v42 = vld [vmem:[%s6632_s1 + $0xe0] sm:$0xff] }
  0x48   : > { %4266 = vmatprep.subr.mxu0 %v3417_v44  ;;  %4204 = vmatprep.subr.mxu1 %v3376_v13 }
  0x49   : > { %4097 = vmatmul.mubr.msk.f32.gmra.mxu1 %vm396_vm1, %v4876_v31  ;;  %4155 = vmatmul.mubr.msk.f32.vlgmr.msra.gmra.mxu0 %vm396_vm1, %v980_v47  ;;  %v992_v47 = vrot.slane %v4923_v51, 2 }
  0x4a   : > { %4099 = vmatprep.mubr.msk.f32.mxu1 %vm396_vm1, %v4914_v49  ;;  %4157 = vmatprep.mubr.msk.f32.mxu0 %vm396_vm1, %v5249_v36 }
  0x4b   : > { %4267 = vmatpush3.msra.mxu0 %v3417_v44  ;;  %4205 = vmatpush3.msra.mxu1 %v3376_v13  ;;  %v5290_v44 = vsel %vm975_vm2, %v987_v16, %v989_v50  ;;  %v994_v13 = vrot.slane %v4951_v60, 2  ;;  %v5294_v23 = vsel %vm975_vm2, %v991_v10, %v992_v47  ;;  %v3373_v60 = vld [vmem:[%s6632_s1 + $0xd8] sm:$0xff]  ;;  %v3414_v16 = vld [vmem:[%s6632_s1 + $0x120] sm:$0xff]  ;;  %v1001_v10 = vrot.slane %v5016_v39, 2 }
  0x4c   : > { %4268 = vmatprep.subr.mxu0 %v3416_v26  ;;  %4206 = vmatprep.subr.mxu1 %v3375_v2  ;;  %6747 = vst [vmem:[#allocation31_spill] sm:$0xff] %v5290_v44 }
  0x4d   : > { %4100 = vmatmul.mubr.msk.f32.gmra.mxu1 %vm396_vm1, %v4923_v51  ;;  %4158 = vmatmul.mubr.msk.f32.gmra.mxu0 %vm396_vm1, %v5267_v54  ;;  %v997_v54 = vrot.slane %v4969_v4, 2 }
  0x4e   : > { %4102 = vmatprep.mubr.msk.f32.mxu1 %vm396_vm1, %v4957_v62  ;;  %4160 = vmatprep.mubr.msk.f32.mxu0 %vm396_vm1, %v5271_v38 }
  0x4f   : > { %4269 = vmatpush3.msra.mxu0 %v3416_v26  ;;  %4207 = vmatpush3.msra.mxu1 %v3375_v2  ;;  %v5313_v26 = vsel %vm975_vm2, %v992_v47, %v994_v13  ;;  %v999_v2 = vrot.slane %v4999_v24, 2  ;;  %v5317_v50 = vsel %vm975_vm2, %v996_v55, %v997_v54  ;;  %v3372_v24 = vld [vmem:[%s6632_s1 + $0xd0] sm:$0xff]  ;;  %v3413_v47 = vld [vmem:[%s6632_s1 + $0x118] sm:$0xff]  ;;  %v1006_v55 = vrot.slane %v5066_v28, 2 }
  0x50   : > { %4208 = vmatprep.subr.mxu1 %v3374_v42  ;;  %4270 = vmatprep.subr.mxu0 %v3415_v6  ;;  %6748 = vst [vmem:[#allocation32_spill] sm:$0xff] %v5313_v26 }
  0x51   : > { %4103 = vmatmul.mubr.msk.f32.gmra.mxu1 %vm396_vm1, %v4969_v4  ;;  %4161 = vmatmul.mubr.msk.f32.gmra.mxu0 %vm396_vm1, %v5290_v44  ;;  %v1002_v44 = vrot.slane %v5022_v41, 2 }
  0x52   : > { %4105 = vmatprep.mubr.msk.f32.mxu1 %vm396_vm1, %v5016_v39  ;;  %4163 = vmatprep.mubr.msk.f32.mxu0 %vm396_vm1, %v5294_v23 }
  0x53   : > { %4209 = vmatpush3.msra.mxu1 %v3374_v42  ;;  %4271 = vmatpush3.msra.mxu0 %v3415_v6  ;;  %v5336_v42 = vsel %vm975_vm2, %v997_v54, %v999_v2  ;;  %v1004_v6 = vrot.slane %v5051_v0, 2  ;;  %v5340_v13 = vsel %vm975_vm2, %v1001_v10, %v1002_v44  ;;  %v3371_v0 = vld [vmem:[%s6632_s1 + $0xc8] sm:$0xff]  ;;  %v3412_v54 = vld [vmem:[%s6632_s1 + $0x110] sm:$0xff]  ;;  %v1011_v10 = vrot.slane %v5116_v27, 2 }
  0x54   : > { %4210 = vmatprep.subr.mxu1 %v3373_v60  ;;  %4272 = vmatprep.subr.mxu0 %v3414_v16  ;;  %6749 = vst [vmem:[#allocation33_spill] sm:$0xff] %v5336_v42 }
  0x55   : > { %4106 = vmatmul.mubr.msk.f32.gmra.mxu1 %vm396_vm1, %v5022_v41  ;;  %4164 = vmatmul.mubr.msk.f32.gmra.mxu0 %vm396_vm1, %v5313_v26  ;;  %v1007_v26 = vrot.slane %v5069_v34, 2 }
  0x56   : > { %4108 = vmatprep.mubr.msk.f32.mxu1 %vm396_vm1, %v5066_v28  ;;  %4166 = vmatprep.mubr.msk.f32.mxu0 %vm396_vm1, %v5317_v50 }
  0x57   : > { %4211 = vmatpush3.msra.mxu1 %v3373_v60  ;;  %4273 = vmatpush3.msra.mxu0 %v3414_v16  ;;  %v5359_v60 = vsel %vm975_vm2, %v1002_v44, %v1004_v6  ;;  %v1009_v16 = vrot.slane %v5108_v59, 2  ;;  %v5363_v2 = vsel %vm975_vm2, %v1006_v55, %v1007_v26  ;;  %v3370_v59 = vld [vmem:[%s6632_s1 + $0xc0] sm:$0xff]  ;;  %v3411_v44 = vld [vmem:[%s6632_s1 + $0x108] sm:$0xff]  ;;  %v1016_v55 = vrot.slane %v5155_v18, 2 }
  0x58   : > { %4212 = vmatprep.subr.mxu1 %v3372_v24  ;;  %4274 = vmatprep.subr.mxu0 %v3413_v47  ;;  %6750 = vst [vmem:[#allocation34_spill] sm:$0xff] %v5359_v60 }
  0x59   : > { %4109 = vmatmul.mubr.msk.f32.gmra.mxu1 %vm396_vm1, %v5069_v34  ;;  %4167 = vmatmul.mubr.msk.f32.gmra.mxu0 %vm396_vm1, %v5336_v42  ;;  %v1012_v42 = vrot.slane %v5119_v61, 2 }
  0x5a   : > { %4111 = vmatprep.mubr.msk.f32.mxu1 %vm396_vm1, %v5116_v27  ;;  %4169 = vmatprep.mubr.msk.f32.mxu0 %vm396_vm1, %v5340_v13 }
  0x5b   : > { %4213 = vmatpush3.msra.mxu1 %v3372_v24  ;;  %4275 = vmatpush3.msra.mxu0 %v3413_v47  ;;  %v5382_v24 = vsel %vm975_vm2, %v1007_v26, %v1009_v16  ;;  %v1014_v47 = vrot.slane %v5149_v12, 2  ;;  %v5386_v6 = vsel %vm975_vm2, %v1011_v10, %v1012_v42  ;;  %v3410_v12 = vld [vmem:[%s6632_s1 + $0x100] sm:$0xff]  ;;  %v5400_v26 = vld [vmem:[%s6632_s1 + $0x178] sm:$0xff]  ;;  %v1021_v10 = vrot.slane %v4824_v7, 2 }
  0x5c   : > { %4214 = vmatprep.subr.mxu1 %v3371_v0  ;;  %4276 = vmatprep.subr.mxu0 %v3412_v54  ;;  %6751 = vst [vmem:[#allocation35_spill] sm:$0xff] %v5382_v24 }
  0x5d   : > { %4112 = vmatmul.mubr.msk.f32.gmra.mxu1 %vm396_vm1, %v5119_v61  ;;  %4170 = vmatmul.mubr.msk.f32.gmra.mxu0 %vm396_vm1, %v5359_v60  ;;  %v1017_v60 = vrot.slane %v5158_v57, 2 }
  0x5e   : > { %4114 = vmatprep.mubr.msk.f32.mxu1 %vm396_vm1, %v5155_v18  ;;  %4172 = vmatprep.mubr.msk.f32.mxu0 %vm396_vm1, %v5363_v2 }
  0x5f   : > { %4215 = vmatpush3.msra.mxu1 %v3371_v0  ;;  %4277 = vmatpush3.msra.mxu0 %v3412_v54  ;;  %v5407_v0 = vsel %vm975_vm2, %v1012_v42, %v1014_v47  ;;  %v1019_v54 = vrot.slane %v5187_v35, 2  ;;  %v5411_v16 = vsel %vm975_vm2, %v1016_v55, %v1017_v60  ;;  %v5423_v35 = vld [vmem:[%s6632_s1 + $0x1b8] sm:$0xff]  ;;  %v1026_v47 = vrot.slane %v4853_v20, 2 }
  0x60   : > { %4216 = vmatprep.subr.mxu1 %v3370_v59  ;;  %4278 = vmatprep.subr.mxu0 %v3411_v44  ;;  %v1027_v55 = vrot.slane %v4856_v21, 2 }
  0x61   : > { %4115 = vmatmul.mubr.msk.f32.gmra.mxu1 %vm396_vm1, %v5158_v57  ;;  %4173 = vmatmul.mubr.msk.f32.gmra.mxu0 %vm396_vm1, %v5382_v24  ;;  %v1022_v24 = vrot.slane %v4830_v9, 2  ;;  %v5430_v42 = vsel %vm975_vm2, %v1017_v60, %v1019_v54  ;;  %v1029_v60 = vrot.slane %v4870_v29, 2  ;;  %v1031_v54 = vrot.slane %v4879_v32, 2 }
  0x62   : > { %4117 = vmatprep.mubr.msk.f32.mxu1 %vm396_vm1, %v4824_v7  ;;  %4175 = vmatprep.mubr.msk.f32.mxu0 %vm396_vm1, %v5386_v6 }
  0x63   : > { %4217 = vmatpush3.msra.mxu1 %v3370_v59  ;;  %4279 = vmatpush3.msra.mxu0 %v3411_v44  ;;  %v1024_v59 = vrot.slane %v4841_v14, 2  ;;  %v5434_v44 = vsel %vm975_vm2, %v1021_v10, %v1022_v24  ;;  %v1032_v10 = vrot.slane %v4882_v33, 2  ;;  %v5465_v29 = vsel %vm975_vm2, %v1027_v55, %v1029_v60 }
  0x64   : > { %4280 = vmatprep.subr.mxu0 %v3410_v12  ;;  %4330 = vmatprep.subr.mxu1 %v5400_v26  ;;  %6752 = vst [vmem:[#allocation36_spill] sm:$0xff] %v5434_v44 }
  0x65   : > { %4118 = vmatmul.mubr.msk.f32.gmra.mxu1 %vm396_vm1, %v4830_v9  ;;  %4176 = vmatmul.mubr.msk.f32.gmra.mxu0 %vm396_vm1, %v5407_v0  ;;  %v5448_v14 = vsel %vm975_vm2, %v1022_v24, %v1024_v59  ;;  %v1034_v24 = vrot.slane %v4911_v48, 2  ;;  %v5469_v59 = vsel %vm975_vm2, %v1031_v54, %v1032_v10  ;;  %v1041_v54 = vrot.slane %v4972_v8, 2 }
  0x66   : > { %4120 = vmatprep.mubr.msk.f32.mxu1 %vm396_vm1, %v4853_v20  ;;  %4178 = vmatprep.mubr.msk.f32.mxu0 %vm396_vm1, %v5411_v16  ;;  %6754 = vst [vmem:[#allocation38_spill] sm:$0xff] %v5469_v59 }
  0x67   : > { %4281 = vmatpush3.msra.mxu0 %v3410_v12  ;;  %v5452_v12 = vsel %vm975_vm2, %v1026_v47, %v1027_v55  ;;  %v1036_v47 = vrot.slane %v4926_v52, 2  ;;  %v5482_v48 = vsel %vm975_vm2, %v1032_v10, %v1034_v24  ;;  %v1039_v55 = vrot.slane %v4966_v3, 2 }
  0x68   : > { %4394 = vmatprep.subr.mxu0 %v5423_v35  ;;  %6753 = vst [vmem:[#allocation37_spill] sm:$0xff] %v5452_v12  ;;  %6755 = vst [vmem:[#allocation39_spill] sm:$0xff] %v5482_v48  ;;  %v1044_v10 = vrot.slane %v5013_v37, 2 }
  0x69   : > { %4121 = vmatmul.mubr.msk.f32.gmra.mxu1 %vm396_vm1, %v4856_v21  ;;  %4179 = vmatmul.mubr.msk.f32.gmra.mxu0 %vm396_vm1, %v5430_v42 }
  0x6a   : > { %4123 = vmatprep.mubr.msk.f32.mxu1 %vm396_vm1, %v4879_v32  ;;  %4181 = vmatprep.mubr.msk.f32.mxu0 %vm396_vm1, %v5434_v44  ;;  %v1037_v44 = vrot.slane %v4929_v53, 2 }
  0x6c   : > { %v5486_v60 = vsel %vm975_vm2, %v1036_v47, %v1037_v44  ;;  %v5499_v3 = vsel %vm975_vm2, %v1037_v44, %v1039_v55  ;;  %v1046_v47 = vrot.slane %v5025_v43, 2  ;;  %v1049_v44 = vrot.slane %v5063_v22, 2 }
  0x6d   : > { %4124 = vmatmul.mubr.msk.f32.gmra.mxu1 %vm396_vm1, %v4882_v33  ;;  %4182 = vmatmul.mubr.msk.f32.gmra.mxu0 %vm396_vm1, %v5448_v14  ;;  %6756 = vst [vmem:[#allocation40_spill] sm:$0xff] %v5486_v60  ;;  %6757 = vst [vmem:[#allocation41_spill] sm:$0xff] %v5499_v3 }
  0x6e   : > { %4126 = vmatprep.mubr.msk.f32.mxu1 %vm396_vm1, %v4926_v52  ;;  %4184 = vmatprep.mubr.msk.f32.mxu0 %vm396_vm1, %v5452_v12  ;;  %v1042_v12 = vrot.slane %v4975_v11, 2 }
  0x70   : > { %v5503_v24 = vsel %vm975_vm2, %v1041_v54, %v1042_v12  ;;  %v5516_v37 = vsel %vm975_vm2, %v1042_v12, %v1044_v10  ;;  %v1051_v54 = vrot.slane %v5079_v63, 2  ;;  %v1054_v12 = vrot.slane %v5111_v1, 2  ;;  %v6765_v1 = vld [vmem:[#allocation9_spill] sm:$0xff] }
  0x71   : > { %4127 = vmatmul.mubr.msk.f32.gmra.mxu1 %vm396_vm1, %v4929_v53  ;;  %4185 = vmatmul.mubr.msk.f32.gmra.mxu0 %vm396_vm1, %v5465_v29  ;;  %6758 = vst [vmem:[#allocation42_spill] sm:$0xff] %v5503_v24  ;;  %6759 = vst [vmem:[#allocation43_spill] sm:$0xff] %v5516_v37 }
  0x72   : > { %4129 = vmatprep.mubr.msk.f32.mxu1 %vm396_vm1, %v4972_v8  ;;  %4187 = vmatprep.mubr.msk.f32.mxu0 %vm396_vm1, %v5469_v59  ;;  %v1047_v59 = vrot.slane %v5028_v46, 2 }
  0x74   : > { %v5520_v55 = vsel %vm975_vm2, %v1046_v47, %v1047_v59  ;;  %v5533_v22 = vsel %vm975_vm2, %v1047_v59, %v1049_v44  ;;  %v3456_v47 = vld [vmem:[%s6632_s1 + $0x170] sm:$0xff]  ;;  %v6766_v59 = vld [vmem:[#allocation11_spill] sm:$0xff] }
  0x75   : > { %4130 = vmatmul.mubr.msk.f32.gmra.mxu1 %vm396_vm1, %v4975_v11  ;;  %4188 = vmatmul.mubr.msk.f32.gmra.mxu0 %vm396_vm1, %v5482_v48  ;;  %6760 = vst [vmem:[#allocation44_spill] sm:$0xff] %v5520_v55  ;;  %6761 = vst [vmem:[#allocation45_spill] sm:$0xff] %v5533_v22  ;;  %v3453_v44 = vld [vmem:[%s6632_s1 + $0x158] sm:$0xff] }
  0x76   : > { %4132 = vmatprep.mubr.msk.f32.mxu1 %vm396_vm1, %v5025_v43  ;;  %4190 = vmatprep.mubr.msk.f32.mxu0 %vm396_vm1, %v5486_v60  ;;  %v1052_v60 = vrot.slane %v5082_v25, 2 }
  0x78   : > { %v5537_v10 = vsel %vm975_vm2, %v1051_v54, %v1052_v60  ;;  %v3495_v54 = vld [vmem:[%s6632_s1 + $0x1a8] sm:$0xff] }
  0x79   : > { %4133 = vmatmul.mubr.msk.f32.gmra.mxu1 %vm396_vm1, %v5028_v46  ;;  %4191 = vmatmul.mubr.msk.f32.gmra.mxu0 %vm396_vm1, %v5499_v3  ;;  %6762 = vst [vmem:[#allocation46_spill] sm:$0xff] %v5537_v10 }
  0x7a   : > { %4135 = vmatprep.mubr.msk.f32.mxu1 %vm396_vm1, %v5079_v63  ;;  %4193 = vmatprep.mubr.msk.f32.mxu0 %vm396_vm1, %v5503_v24 }
  0x7d   : > { %4136 = vmatmul.mubr.msk.f32.gmra.mxu1 %vm396_vm1, %v5082_v25  ;;  %4194 = vmatmul.mubr.msk.f32.gmra.mxu0 %vm396_vm1, %v5516_v37 }
  0x7e   : > { %4196 = vmatprep.mubr.msk.f32.mxu0 %vm396_vm1, %v5520_v55  ;;  %4218 = vmatprep.mubr.msk.f32.mxu1 %vm396_vm1, %v4844_v15  ;;  %v5551_v15 = vsel %vm975_vm2, %v1052_v60, %v1054_v12  ;;  %v6767_v60 = vld [vmem:[#allocation13_spill] sm:$0xff] }
  0x7f   : > { %6763 = vst [vmem:[#allocation47_spill] sm:$0xff] %v5551_v15  ;;  %v6769_v12 = vld [vmem:[#allocation17_spill] sm:$0xff] }
  0x81   : > { %4197 = vmatmul.mubr.msk.f32.gmra.mxu0 %vm396_vm1, %v5533_v22  ;;  %4219 = vmatmul.mubr.msk.f32.vlgmr.msra.gmra.mxu1 %vm396_vm1, %v4850_v19  ;;  %v3455_v19 = vld [vmem:[%s6632_s1 + $0x168] sm:$0xff] }
  0x82   : > { %4199 = vmatprep.mubr.msk.f32.mxu0 %vm396_vm1, %v5537_v10  ;;  %4221 = vmatprep.mubr.msk.f32.mxu1 %vm396_vm1, %v4873_v30  ;;  %v6764_v30 = vld [vmem:[#allocation7_spill] sm:$0xff] }
  0x83   : > { %4331 = vmatpush3.msra.mxu1 %v5400_v26  ;;  %v3454_v26 = vld [vmem:[%s6632_s1 + $0x160] sm:$0xff] }
  0x84   : > { %4332 = vmatprep.subr.mxu1 %v3456_v47 }
  0x85   : > { %4200 = vmatmul.mubr.msk.f32.gmra.mxu0 %vm396_vm1, %v5551_v15  ;;  %4222 = vmatmul.mubr.msk.f32.gmra.mxu1 %vm396_vm1, %v4876_v31  ;;  %v3496_v31 = vld [vmem:[%s6632_s1 + $0x1b0] sm:$0xff] }
  0x86   : > { %4224 = vmatprep.mubr.msk.f32.mxu1 %vm396_vm1, %v4914_v49  ;;  %4282 = vmatprep.mubr.msk.f32.mxu0 %vm396_vm1, %v6764_v30  ;;  %v6770_v30 = vld [vmem:[#allocation19_spill] sm:$0xff] }
  0x87   : > { %4333 = vmatpush3.msra.mxu1 %v3456_v47  ;;  %v3452_v47 = vld [vmem:[%s6632_s1 + $0x150] sm:$0xff] }
  0x88   : > { %4334 = vmatprep.subr.mxu1 %v3455_v19 }
  0x89   : > { %4225 = vmatmul.mubr.msk.f32.gmra.mxu1 %vm396_vm1, %v4923_v51  ;;  %4283 = vmatmul.mubr.msk.f32.vlgmr.msra.gmra.mxu0 %vm396_vm1, %v6765_v1  ;;  %v6771_v1 = vld [vmem:[#allocation21_spill] sm:$0xff] }
  0x8a   : > { %4227 = vmatprep.mubr.msk.f32.mxu1 %vm396_vm1, %v4957_v62  ;;  %4285 = vmatprep.mubr.msk.f32.mxu0 %vm396_vm1, %v6766_v59 }
  0x8b   : > { %4395 = vmatpush3.msra.mxu0 %v5423_v35  ;;  %4335 = vmatpush3.msra.mxu1 %v3455_v19  ;;  %v6768_v35 = vld [vmem:[#allocation15_spill] sm:$0xff]  ;;  %v3494_v19 = vld [vmem:[%s6632_s1 + $0x1a0] sm:$0xff] }
  0x8c   : > { %4396 = vmatprep.subr.mxu0 %v3496_v31  ;;  %4336 = vmatprep.subr.mxu1 %v3454_v26 }
  0x8d   : > { %4228 = vmatmul.mubr.msk.f32.gmra.mxu1 %vm396_vm1, %v4969_v4  ;;  %4286 = vmatmul.mubr.msk.f32.gmra.mxu0 %vm396_vm1, %v6767_v60 }
  0x8e   : > { %4230 = vmatprep.mubr.msk.f32.mxu1 %vm396_vm1, %v5016_v39  ;;  %4288 = vmatprep.mubr.msk.f32.mxu0 %vm396_vm1, %v6768_v35 }
  0x8f   : > { %4397 = vmatpush3.msra.mxu0 %v3496_v31  ;;  %4337 = vmatpush3.msra.mxu1 %v3454_v26  ;;  %v3451_v31 = vld [vmem:[%s6632_s1 + $0x148] sm:$0xff]  ;;  %v3493_v26 = vld [vmem:[%s6632_s1 + $0x198] sm:$0xff] }
  0x90   : > { %4338 = vmatprep.subr.mxu1 %v3453_v44  ;;  %4398 = vmatprep.subr.mxu0 %v3495_v54 }
  0x91   : > { %4231 = vmatmul.mubr.msk.f32.gmra.mxu1 %vm396_vm1, %v5022_v41  ;;  %4289 = vmatmul.mubr.msk.f32.gmra.mxu0 %vm396_vm1, %v6769_v12 }
  0x92   : > { %4233 = vmatprep.mubr.msk.f32.mxu1 %vm396_vm1, %v5066_v28  ;;  %4291 = vmatprep.mubr.msk.f32.mxu0 %vm396_vm1, %v6770_v30  ;;  %v3492_v30 = vld [vmem:[%s6632_s1 + $0x190] sm:$0xff] }
  0x93   : > { %4339 = vmatpush3.msra.mxu1 %v3453_v44  ;;  %4399 = vmatpush3.msra.mxu0 %v3495_v54  ;;  %v6772_v44 = vld [vmem:[#allocation23_spill] sm:$0xff]  ;;  %v6773_v54 = vld [vmem:[#allocation25_spill] sm:$0xff] }
  0x94   : > { %4340 = vmatprep.subr.mxu1 %v3452_v47  ;;  %4400 = vmatprep.subr.mxu0 %v3494_v19 }
  0x95   : > { %4234 = vmatmul.mubr.msk.f32.gmra.mxu1 %vm396_vm1, %v5069_v34  ;;  %4292 = vmatmul.mubr.msk.f32.gmra.mxu0 %vm396_vm1, %v6771_v1  ;;  %v3450_v1 = vld [vmem:[%s6632_s1 + $0x140] sm:$0xff] }
  0x96   : > { %4236 = vmatprep.mubr.msk.f32.mxu1 %vm396_vm1, %v5116_v27  ;;  %4294 = vmatprep.mubr.msk.f32.mxu0 %vm396_vm1, %v6772_v44 }
  0x97   : > { %4341 = vmatpush3.msra.mxu1 %v3452_v47  ;;  %4401 = vmatpush3.msra.mxu0 %v3494_v19  ;;  %v6774_v47 = vld [vmem:[#allocation27_spill] sm:$0xff]  ;;  %v3491_v19 = vld [vmem:[%s6632_s1 + $0x188] sm:$0xff] }
  0x98   : > { %4342 = vmatprep.subr.mxu1 %v3451_v31  ;;  %4402 = vmatprep.subr.mxu0 %v3493_v26 }
  0x99   : > { %4237 = vmatmul.mubr.msk.f32.gmra.mxu1 %vm396_vm1, %v5119_v61  ;;  %4295 = vmatmul.mubr.msk.f32.gmra.mxu0 %vm396_vm1, %v6773_v54  ;;  %v3537_v54 = vld [vmem:[%s6632_s1 + $0x1f8] sm:$0xff] }
  0x9a   : > { %4239 = vmatprep.mubr.msk.f32.mxu1 %vm396_vm1, %v5155_v18  ;;  %4297 = vmatprep.mubr.msk.f32.mxu0 %vm396_vm1, %v6774_v47 }
  0x9b   : > { %4343 = vmatpush3.msra.mxu1 %v3451_v31  ;;  %4403 = vmatpush3.msra.mxu0 %v3493_v26  ;;  %v3490_v31 = vld [vmem:[%s6632_s1 + $0x180] sm:$0xff] }
  0x9c   : > { %4344 = vmatprep.subr.mxu1 %v3450_v1  ;;  %4404 = vmatprep.subr.mxu0 %v3492_v30 }
  0x9d   : > { %4240 = vmatmul.mubr.msk.f32.gmra.mxu1 %vm396_vm1, %v5158_v57  ;;  %4298 = vmatmul.mubr.msk.f32.gmra.mxu0 %vm396_vm1, %v5173_v58 }
  0x9e   : > { %4242 = vmatprep.mubr.msk.f32.mxu1 %vm396_vm1, %v4824_v7  ;;  %4300 = vmatprep.mubr.msk.f32.mxu0 %vm396_vm1, %v5182_v17  ;;  %v3577_v7 = vld [vmem:[%s6632_s1 + $0x238] sm:$0xff] }
  0x9f   : > { %4345 = vmatpush3.msra.mxu1 %v3450_v1  ;;  %4405 = vmatpush3.msra.mxu0 %v3492_v30  ;;  %v5705_v30 = vld [vmem:[%s4815_s20 + $0x180] sm:$0xff]  ;;  %v5716_v1 = vld [vmem:[%s4815_s20 + $0x188] sm:$0xff] }
  0xa0   : > { %4406 = vmatprep.subr.mxu0 %v3491_v19  ;;  %4458 = vmatprep.subr.mxu1 %v3537_v54  ;;  %v1660_v26 = vrot.slane %v5716_v1, 1 }
  0xa1   : > { %4243 = vmatmul.mubr.msk.f32.gmra.mxu1 %vm396_vm1, %v4830_v9  ;;  %4301 = vmatmul.mubr.msk.f32.gmra.mxu0 %vm396_vm1, %v5199_v56  ;;  %v6775_v9 = vld [vmem:[#allocation5_spill] sm:$0xff] }
  0xa2   : > { %4245 = vmatprep.mubr.msk.f32.mxu1 %vm396_vm1, %v4853_v20  ;;  %4303 = vmatprep.mubr.msk.f32.mxu0 %vm396_vm1, %v5205_v40  ;;  %v6776_v20 = vld [vmem:[#allocation6_spill] sm:$0xff] }
  0xa3   : > { %4407 = vmatpush3.msra.mxu0 %v3491_v19  ;;  %v5721_v19 = vld [vmem:[%s4815_s20 + $0x190] sm:$0x3] }
  0xa4   : > { %4408 = vmatprep.subr.mxu0 %v3490_v31 }
  0xa5   : > { %4246 = vmatmul.mubr.msk.f32.gmra.mxu1 %vm396_vm1, %v4856_v21  ;;  %4304 = vmatmul.mubr.msk.f32.gmra.mxu0 %vm396_vm1, %v5225_v5  ;;  %v6777_v21 = vld [vmem:[#allocation8_spill] sm:$0xff] }
  0xa6   : > { %4248 = vmatprep.mubr.msk.f32.mxu1 %vm396_vm1, %v4879_v32  ;;  %4306 = vmatprep.mubr.msk.f32.mxu0 %vm396_vm1, %v6775_v9  ;;  %v6778_v32 = vld [vmem:[#allocation10_spill] sm:$0xff] }
  0xa7   : > { %4409 = vmatpush3.msra.mxu0 %v3490_v31  ;;  %v1662_v31 = vrot.slane %v5721_v19, 1 }
  0xa8   : > { %4522 = vmatprep.subr.mxu0 %v3577_v7 }
  0xa9   : > { %4249 = vmatmul.mubr.msk.f32.gmra.mxu1 %vm396_vm1, %v4882_v33  ;;  %4307 = vmatmul.mubr.msk.f32.gmra.mxu0 %vm396_vm1, %v6776_v20  ;;  %v6779_v33 = vld [vmem:[#allocation12_spill] sm:$0xff] }
  0xaa   : > { %4251 = vmatprep.mubr.msk.f32.mxu1 %vm396_vm1, %v4926_v52  ;;  %4309 = vmatprep.mubr.msk.f32.mxu0 %vm396_vm1, %v6777_v21  ;;  %v6780_v52 = vld [vmem:[#allocation14_spill] sm:$0xff] }
  0xad   : > { %4252 = vmatmul.mubr.msk.f32.gmra.mxu1 %vm396_vm1, %v4929_v53  ;;  %4310 = vmatmul.mubr.msk.f32.gmra.mxu0 %vm396_vm1, %v6778_v32  ;;  %v6781_v53 = vld [vmem:[#allocation16_spill] sm:$0xff] }
  0xae   : > { %4254 = vmatprep.mubr.msk.f32.mxu1 %vm396_vm1, %v4972_v8  ;;  %4312 = vmatprep.mubr.msk.f32.mxu0 %vm396_vm1, %v6779_v33  ;;  %v6782_v8 = vld [vmem:[#allocation18_spill] sm:$0xff] }
  0xb1   : > { %4255 = vmatmul.mubr.msk.f32.gmra.mxu1 %vm396_vm1, %v4975_v11  ;;  %4313 = vmatmul.mubr.msk.f32.gmra.mxu0 %vm396_vm1, %v6780_v52  ;;  %v6783_v11 = vld [vmem:[#allocation20_spill] sm:$0xff] }
  0xb2   : > { %4257 = vmatprep.mubr.msk.f32.mxu1 %vm396_vm1, %v5025_v43  ;;  %4315 = vmatprep.mubr.msk.f32.mxu0 %vm396_vm1, %v6781_v53  ;;  %v6784_v43 = vld [vmem:[#allocation22_spill] sm:$0xff] }
  0xb5   : > { %4258 = vmatmul.mubr.msk.f32.gmra.mxu1 %vm396_vm1, %v5028_v46  ;;  %4316 = vmatmul.mubr.msk.f32.gmra.mxu0 %vm396_vm1, %v6782_v8  ;;  %v6785_v46 = vld [vmem:[#allocation24_spill] sm:$0xff] }
  0xb6   : > { %4260 = vmatprep.mubr.msk.f32.mxu1 %vm396_vm1, %v5079_v63  ;;  %4318 = vmatprep.mubr.msk.f32.mxu0 %vm396_vm1, %v6783_v11  ;;  %v1659_v63 = vrot.slane %v5705_v30, 1  ;;  %v6789_v11 = vld [vmem:[#allocation30_spill] sm:$0xff] }
  0xb9   : > { %4261 = vmatmul.mubr.msk.f32.gmra.mxu1 %vm396_vm1, %v5082_v25  ;;  %4319 = vmatmul.mubr.msk.f32.gmra.mxu0 %vm396_vm1, %v6784_v43  ;;  %v6786_v25 = vld [vmem:[#allocation26_spill] sm:$0xff]  ;;  %v6788_v43 = vld [vmem:[#allocation29_spill] sm:$0xff] }
  0xba   : > { %4263 = vmatprep.mubr.msk.f32.mxu1 %vm396_vm1, %v5705_v30  ;;  %4321 = vmatprep.mubr.msk.f32.mxu0 %vm396_vm1, %v6785_v46  ;;  %v5733_v46 = vsel %vm306_vm0, %v1659_v63, %v1660_v26  ;;  %v3535_v63 = vld [vmem:[%s6632_s1 + $0x1e8] sm:$0xff] }
  0xbb   : > { %6787 = vst [vmem:[#allocation7_spill] sm:$0xff] %v5733_v46 }
  0xbd   : > { %4264 = vmatmul.mubr.msk.f32.gmra.mxu1 %vm396_vm1, %v5716_v1  ;;  %4322 = vmatmul.mubr.msk.f32.gmra.mxu0 %vm396_vm1, %v6786_v25 }
  0xbe   : > { %4324 = vmatprep.mubr.msk.f32.mxu0 %vm396_vm1, %v5152_v45  ;;  %4346 = vmatprep.mubr.msk.f32.mxu1 %vm396_vm1, %v5249_v36  ;;  %v3536_v45 = vld [vmem:[%s6632_s1 + $0x1f0] sm:$0xff]  ;;  %v5747_v36 = vsel %vm306_vm0, %v1660_v26, %v1662_v31  ;;  %v4644_v26 = vld [vmem:[%s4815_s20 + $0x38] sm:$0xff] }
  0xbf   : > { %6790 = vst [vmem:[#allocation9_spill] sm:$0xff] %v5747_v36  ;;  %v3576_v31 = vld [vmem:[%s6632_s1 + $0x230] sm:$0xff] }
  0xc1   : > { %4325 = vmatmul.mubr.msk.f32.gmra.mxu0 %vm396_vm1, %v6788_v43  ;;  %4347 = vmatmul.mubr.msk.f32.vlgmr.msra.gmra.mxu1 %vm396_vm1, %v6789_v11  ;;  %v6791_v11 = vld [vmem:[#allocation31_spill] sm:$0xff] }
  0xc2   : > { %4327 = vmatprep.mubr.msk.f32.mxu0 %vm396_vm1, %v5733_v46  ;;  %4349 = vmatprep.mubr.msk.f32.mxu1 %vm396_vm1, %v5271_v38  ;;  %v4643_v46 = vld [vmem:[%s4815_s20 + $0x30] sm:$0xff] }
  0xc3   : > { %4459 = vmatpush3.msra.mxu1 %v3537_v54  ;;  %v6792_v54 = vld [vmem:[#allocation32_spill] sm:$0xff] }
  0xc4   : > { %4460 = vmatprep.subr.mxu1 %v3536_v45 }
  0xc5   : > { %4328 = vmatmul.mubr.msk.f32.gmra.mxu0 %vm396_vm1, %v5747_v36  ;;  %4350 = vmatmul.mubr.msk.f32.gmra.mxu1 %vm396_vm1, %v6791_v11  ;;  %v3534_v36 = vld [vmem:[%s6632_s1 + $0x1e0] sm:$0xff] }
  0xc6   : > { %4352 = vmatprep.mubr.msk.f32.mxu1 %vm396_vm1, %v5294_v23  ;;  %4410 = vmatprep.mubr.msk.f32.mxu0 %vm396_vm1, %v4643_v46  ;;  %v3533_v46 = vld [vmem:[%s6632_s1 + $0x1d8] sm:$0xff] }
  0xc7   : > { %4461 = vmatpush3.msra.mxu1 %v3536_v45  ;;  %v6793_v45 = vld [vmem:[#allocation33_spill] sm:$0xff] }
  0xc8   : > { %4462 = vmatprep.subr.mxu1 %v3535_v63 }
  0xc9   : > { %4353 = vmatmul.mubr.msk.f32.gmra.mxu1 %vm396_vm1, %v6792_v54  ;;  %4411 = vmatmul.mubr.msk.f32.vlgmr.msra.gmra.mxu0 %vm396_vm1, %v4644_v26  ;;  %v3575_v26 = vld [vmem:[%s6632_s1 + $0x228] sm:$0xff] }
  0xca   : > { %4355 = vmatprep.mubr.msk.f32.mxu1 %vm396_vm1, %v5317_v50  ;;  %4413 = vmatprep.mubr.msk.f32.mxu0 %vm396_vm1, %v4914_v49  ;;  %v6794_v49 = vld [vmem:[#allocation34_spill] sm:$0xff] }
  0xcb   : > { %4523 = vmatpush3.msra.mxu0 %v3577_v7  ;;  %4463 = vmatpush3.msra.mxu1 %v3535_v63  ;;  %v3574_v7 = vld [vmem:[%s6632_s1 + $0x220] sm:$0xff]  ;;  %v4645_v63 = vld [vmem:[%s4815_s20 + $0xd8] sm:$0xff] }
  0xcc   : > { %4524 = vmatprep.subr.mxu0 %v3576_v31  ;;  %4464 = vmatprep.subr.mxu1 %v3534_v36 }
  0xcd   : > { %4356 = vmatmul.mubr.msk.f32.gmra.mxu1 %vm396_vm1, %v6793_v45  ;;  %4414 = vmatmul.mubr.msk.f32.gmra.mxu0 %vm396_vm1, %v4923_v51  ;;  %v3532_v51 = vld [vmem:[%s6632_s1 + $0x1d0] sm:$0xff] }
  0xce   : > { %4358 = vmatprep.mubr.msk.f32.mxu1 %vm396_vm1, %v5340_v13  ;;  %4416 = vmatprep.mubr.msk.f32.mxu0 %vm396_vm1, %v4957_v62  ;;  %v6795_v62 = vld [vmem:[#allocation35_spill] sm:$0xff] }
  0xcf   : > { %4525 = vmatpush3.msra.mxu0 %v3576_v31  ;;  %4465 = vmatpush3.msra.mxu1 %v3534_v36  ;;  %v3573_v36 = vld [vmem:[%s6632_s1 + $0x218] sm:$0xff] }
  0xd0   : > { %4466 = vmatprep.subr.mxu1 %v3533_v46  ;;  %4526 = vmatprep.subr.mxu0 %v3575_v26 }
  0xd1   : > { %4359 = vmatmul.mubr.msk.f32.gmra.mxu1 %vm396_vm1, %v6794_v49  ;;  %4417 = vmatmul.mubr.msk.f32.gmra.mxu0 %vm396_vm1, %v4969_v4  ;;  %v3531_v4 = vld [vmem:[%s6632_s1 + $0x1c8] sm:$0xff] }
  0xd2   : > { %4361 = vmatprep.mubr.msk.f32.mxu1 %vm396_vm1, %v5363_v2  ;;  %4419 = vmatprep.mubr.msk.f32.mxu0 %vm396_vm1, %v5016_v39  ;;  %v3530_v39 = vld [vmem:[%s6632_s1 + $0x1c0] sm:$0xff] }
  0xd3   : > { %4467 = vmatpush3.msra.mxu1 %v3533_v46  ;;  %4527 = vmatpush3.msra.mxu0 %v3575_v26  ;;  %v6798_v46 = vld [vmem:[#allocation38_spill] sm:$0xff] }
  0xd4   : > { %4468 = vmatprep.subr.mxu1 %v3532_v51  ;;  %4528 = vmatprep.subr.mxu0 %v3574_v7  ;;  %v4647_v26 = vld [vmem:[%s4815_s20 + $0xf0] sm:$0xff] }
  0xd5   : > { %4362 = vmatmul.mubr.msk.f32.gmra.mxu1 %vm396_vm1, %v6795_v62  ;;  %4420 = vmatmul.mubr.msk.f32.gmra.mxu0 %vm396_vm1, %v5022_v41  ;;  %v3572_v41 = vld [vmem:[%s6632_s1 + $0x210] sm:$0xff] }
  0xd6   : > { %4364 = vmatprep.mubr.msk.f32.mxu1 %vm396_vm1, %v5386_v6  ;;  %4422 = vmatprep.mubr.msk.f32.mxu0 %vm396_vm1, %v5066_v28  ;;  %v3571_v28 = vld [vmem:[%s6632_s1 + $0x208] sm:$0xff] }
  0xd7   : > { %4469 = vmatpush3.msra.mxu1 %v3532_v51  ;;  %4529 = vmatpush3.msra.mxu0 %v3574_v7 }
  0xd8   : > { %4470 = vmatprep.subr.mxu1 %v3531_v4  ;;  %4530 = vmatprep.subr.mxu0 %v3573_v36 }
  0xd9   : > { %4365 = vmatmul.mubr.msk.f32.gmra.mxu1 %vm396_vm1, %v5407_v0  ;;  %4423 = vmatmul.mubr.msk.f32.gmra.mxu0 %vm396_vm1, %v5069_v34  ;;  %v6796_v34 = vld [vmem:[#allocation36_spill] sm:$0xff] }
  0xda   : > { %4367 = vmatprep.mubr.msk.f32.mxu1 %vm396_vm1, %v5411_v16  ;;  %4425 = vmatprep.mubr.msk.f32.mxu0 %vm396_vm1, %v5116_v27  ;;  %v3570_v27 = vld [vmem:[%s6632_s1 + $0x200] sm:$0xff] }
  0xdb   : > { %4471 = vmatpush3.msra.mxu1 %v3531_v4  ;;  %4531 = vmatpush3.msra.mxu0 %v3573_v36 }
  0xdc   : > { %4472 = vmatprep.subr.mxu1 %v3530_v39  ;;  %4532 = vmatprep.subr.mxu0 %v3572_v41 }
  0xdd   : > { %4368 = vmatmul.mubr.msk.f32.gmra.mxu1 %vm396_vm1, %v5430_v42  ;;  %4426 = vmatmul.mubr.msk.f32.gmra.mxu0 %vm396_vm1, %v5119_v61  ;;  %v6797_v61 = vld [vmem:[#allocation37_spill] sm:$0xff] }
  0xde   : > { %4370 = vmatprep.mubr.msk.f32.mxu1 %vm396_vm1, %v6796_v34  ;;  %4428 = vmatprep.mubr.msk.f32.mxu0 %vm396_vm1, %v5155_v18 }
  0xdf   : > { %4473 = vmatpush3.msra.mxu1 %v3530_v39  ;;  %4533 = vmatpush3.msra.mxu0 %v3572_v41  ;;  %v4648_v39 = vld [vmem:[%s4815_s20 + $0xf8] sm:$0xff]  ;;  %v6799_v41 = vld [vmem:[#allocation40_spill] sm:$0xff] }
  0xe0   : > { %4534 = vmatprep.subr.mxu0 %v3571_v28 }
  0xe1   : > { %4371 = vmatmul.mubr.msk.f32.gmra.mxu1 %vm396_vm1, %v5448_v14  ;;  %4429 = vmatmul.mubr.msk.f32.gmra.mxu0 %vm396_vm1, %v5158_v57  ;;  %v4646_v57 = vld [vmem:[%s4815_s20 + $0xe0] sm:$0xff] }
  0xe2   : > { %4373 = vmatprep.mubr.msk.f32.mxu1 %vm396_vm1, %v6797_v61  ;;  %4431 = vmatprep.mubr.msk.f32.mxu0 %vm396_vm1, %v4645_v63 }
  0xe3   : > { %4535 = vmatpush3.msra.mxu0 %v3571_v28  ;;  %v4649_v28 = vld [vmem:[%s4815_s20 + $0x108] sm:$0xff] }
  0xe4   : > { %4536 = vmatprep.subr.mxu0 %v3570_v27 }
  0xe5   : > { %v5852_v18 = vpop.f32.mrf.mxu0  ;;  %v5854_v31 = vpop.f32.mrf.mxu1  ;;  %4374 = vmatmul.mubr.msk.f32.gmra.mxu1 %vm396_vm1, %v5465_v29  ;;  %4432 = vmatmul.mubr.msk.f32.gmra.mxu0 %vm396_vm1, %v4646_v57 }
  0xe6   : > { %4376 = vmatprep.mubr.msk.f32.mxu1 %vm396_vm1, %v6798_v46  ;;  %4434 = vmatprep.mubr.msk.f32.mxu0 %vm396_vm1, %v4647_v26 }
  0xe7   : > { %v5864_v51 = vpop.f32.mrf.mxu0  ;;  %v5866_v7 = vpop.f32.mrf.mxu1  ;;  %4537 = vmatpush3.msra.mxu0 %v3570_v27 }
  0xe9   : > { %v5868_v4 = vpop.f32.mrf.mxu0  ;;  %v5870_v36 = vpop.f32.mrf.mxu1  ;;  %4377 = vmatmul.mubr.msk.f32.gmra.mxu1 %vm396_vm1, %v5482_v48  ;;  %4435 = vmatmul.mubr.msk.f32.gmra.mxu0 %vm396_vm1, %v4648_v39  ;;  %v4650_v39 = vld [vmem:[%s4815_s20 + $0x110] sm:$0xff] }
  0xea   : > { %4379 = vmatprep.mubr.msk.f32.mxu1 %vm396_vm1, %v6799_v41  ;;  %4437 = vmatprep.mubr.msk.f32.mxu0 %vm396_vm1, %v4649_v28  ;;  %v4651_v28 = vld [vmem:[%s4815_s20 + $0x120] sm:$0xff] }
  0xeb   : > { %v5880_v63 = vpop.f32.mrf.mxu0  ;;  %v5882_v27 = vpop.f32.mrf.mxu1 }
  0xec   : > { %6800 = vst [vmem:[#allocation11_spill] sm:$0xff] %v5882_v27 }
  0xed   : > { %v5884_v57 = vpop.f32.mrf.mxu0  ;;  %v5886_v26 = vpop.f32.mrf.mxu1  ;;  %4380 = vmatmul.mubr.msk.f32.gmra.mxu1 %vm396_vm1, %v5499_v3  ;;  %4438 = vmatmul.mubr.msk.f32.gmra.mxu0 %vm396_vm1, %v4650_v39  ;;  %v4652_v39 = vld [vmem:[%s4815_s20 + $0x128] sm:$0xff]  ;;  %v1935_v3 = vrot.slane %v5716_v1, 2 }
  0xee   : > { %6801 = vst [vmem:[#allocation13_spill] sm:$0xff] %v5886_v26  ;;  %4382 = vmatprep.mubr.msk.f32.mxu1 %vm396_vm1, %v5503_v24  ;;  %4440 = vmatprep.mubr.msk.f32.mxu0 %vm396_vm1, %v4651_v28  ;;  %v4653_v28 = vld [vmem:[%s4815_s20 + $0x138] sm:$0xff]  ;;  %v1934_v24 = vrot.slane %v5705_v30, 2 }
  0xef   : > { %v5896_v43 = vpop.f32.mrf.mxu0  ;;  %v5898_v25 = vpop.f32.mrf.mxu1 }
  0xf0   : > { %6802 = vst [vmem:[#allocation15_spill] sm:$0xff] %v5898_v25 }
  0xf1   : > { %v5900_v41 = vpop.f32.mrf.mxu0  ;;  %v5902_v26 = vpop.f32.mrf.mxu1  ;;  %4383 = vmatmul.mubr.msk.f32.gmra.mxu1 %vm396_vm1, %v5516_v37  ;;  %4441 = vmatmul.mubr.msk.f32.gmra.mxu0 %vm396_vm1, %v4652_v39  ;;  %v4654_v39 = vld [vmem:[%s4815_s20 + $0x140] sm:$0xff] }
  0xf2   : > { %6803 = vst [vmem:[#allocation17_spill] sm:$0xff] %v5902_v26  ;;  %4385 = vmatprep.mubr.msk.f32.mxu1 %vm396_vm1, %v5520_v55  ;;  %4443 = vmatprep.mubr.msk.f32.mxu0 %vm396_vm1, %v4653_v28  ;;  %v4655_v28 = vld [vmem:[%s4815_s20 + $0x150] sm:$0xff]  ;;  %v1937_v55 = vrot.slane %v5721_v19, 2  ;;  %v4657_v19 = vld [vmem:[%s4815_s20 + $0x168] sm:$0xff] }
  0xf3   : > { %v5914_v25 = vpop.f32.mrf.mxu0  ;;  %v5916_v26 = vpop.f32.mrf.mxu1 }
  0xf4   : > { %6804 = vst [vmem:[#allocation23_spill] sm:$0xff] %v5916_v26 }
  0xf5   : > { %v5918_v37 = vpop.f32.mrf.mxu0  ;;  %v5920_v48 = vpop.f32.mrf.mxu1  ;;  %4386 = vmatmul.mubr.msk.f32.gmra.mxu1 %vm396_vm1, %v5533_v22  ;;  %4444 = vmatmul.mubr.msk.f32.gmra.mxu0 %vm396_vm1, %v4654_v39  ;;  %v4656_v39 = vld [vmem:[%s4815_s20 + $0x158] sm:$0xff] }
  0xf6   : > { %6805 = vst [vmem:[#allocation27_spill] sm:$0xff] %v5920_v48  ;;  %4388 = vmatprep.mubr.msk.f32.mxu1 %vm396_vm1, %v5537_v10  ;;  %4446 = vmatprep.mubr.msk.f32.mxu0 %vm396_vm1, %v4655_v28  ;;  %v5936_v48 = vsel %vm975_vm2, %v1934_v24, %v1935_v3  ;;  %v5951_v24 = vsel %vm975_vm2, %v1935_v3, %v1937_v55 }
  0xf7   : > { %v5931_v26 = vpop.f32.mrf.mxu0  ;;  %v5933_v27 = vpop.f32.mrf.mxu1  ;;  %6807 = vst [vmem:[#allocation6_spill] sm:$0xff] %v5936_v48  ;;  %6809 = vst [vmem:[#allocation10_spill] sm:$0xff] %v5951_v24 }
  0xf8   : > { %6806 = vst [vmem:[#allocation5_spill] sm:$0xff] %v5933_v27 }
  0xf9   : > { %v5938_v22 = vpop.f32.mrf.mxu0  ;;  %v5940_v46 = vpop.f32.mrf.mxu1  ;;  %4389 = vmatmul.mubr.msk.f32.gmra.mxu1 %vm396_vm1, %v5551_v15  ;;  %4447 = vmatmul.mubr.msk.f32.gmra.mxu0 %vm396_vm1, %v4656_v39  ;;  %v4658_v39 = vld [vmem:[%s4815_s20 + $0x170] sm:$0xff] }
  0xfa   : > { %6808 = vst [vmem:[#allocation8_spill] sm:$0xff] %v5940_v46  ;;  %4391 = vmatprep.mubr.msk.f32.mxu1 %vm396_vm1, %v5936_v48  ;;  %4449 = vmatprep.mubr.msk.f32.mxu0 %vm396_vm1, %v4657_v19  ;;  %v5974_v19 = vld [vmem:[%s4815_s20 + $0x198] sm:$0xff] }
  0xfb   : > { %v5953_v28 = vpop.f32.mrf.mxu0  ;;  %v5955_v10 = vpop.f32.mrf.mxu1  ;;  %6813 = vst [vmem:[#allocation18_spill] sm:$0xff] %v5974_v19 }
  0xfc   : > { %6810 = vst [vmem:[#allocation12_spill] sm:$0xff] %v5955_v10 }
  0xfd   : > { %v5957_v46 = vpop.f32.mrf.mxu0  ;;  %v5959_v15 = vpop.f32.mrf.mxu1  ;;  %4392 = vmatmul.mubr.msk.f32.gmra.mxu1 %vm396_vm1, %v5951_v24  ;;  %4450 = vmatmul.mubr.msk.f32.gmra.mxu0 %vm396_vm1, %v4658_v39 }
  0xfe   : > { %6811 = vst [vmem:[#allocation14_spill] sm:$0xff] %v5959_v15  ;;  %4452 = vmatprep.mubr.msk.f32.mxu0 %vm396_vm1, %v5705_v30  ;;  %4474 = vmatprep.mubr.msk.f32.mxu1 %vm396_vm1, %v6766_v59  ;;  %v5988_v59 = vld [vmem:[%s4815_s20 + $0x1a0] sm:$0xff] }
  0xff   : > { %v5969_v3 = vpop.f32.mrf.mxu0  ;;  %v5971_v55 = vpop.f32.mrf.mxu1  ;;  %6814 = vst [vmem:[#allocation30_spill] sm:$0xff] %v5988_v59 }
 0x100   : > { %6812 = vst [vmem:[#allocation16_spill] sm:$0xff] %v5971_v55 }
 0x101   : > { %v5976_v48 = vpop.f32.mrf.mxu0  ;;  %v4092_v15 = vpop.f32.mrf.mxu1  ;;  %4453 = vmatmul.mubr.msk.f32.gmra.mxu0 %vm396_vm1, %v5716_v1  ;;  %4475 = vmatmul.mubr.msk.f32.vlgmr.msra.gmra.mxu1 %vm396_vm1, %v6767_v60  ;;  %v6815_v60 = vld [vmem:[#allocation19_spill] sm:$0xff] }
 0x102   : > { %v822_v30 = vadd.f32 %v4092_v15, %v5852_v18  ;;  %4455 = vmatprep.mubr.msk.f32.mxu0 %vm396_vm1, %v5974_v19  ;;  %4477 = vmatprep.mubr.msk.f32.mxu1 %vm396_vm1, %v6768_v35  ;;  %v6816_v19 = vld [vmem:[#allocation21_spill] sm:$0xff] }
 0x103   : > { %v5990_v39 = vpop.f32.mrf.mxu0  ;;  %v816_v24 = vpop.f32.mrf.mxu1 }
 0x104   : > { %v817_v55 = vadd.f32 %v816_v24, %v5864_v51 }
 0x105   : > { %v5993_v10 = vpop.f32.mrf.mxu0  ;;  %v4095_v1 = vpop.f32.mrf.mxu1  ;;  %4456 = vmatmul.mubr.msk.f32.gmra.mxu0 %vm396_vm1, %v5988_v59  ;;  %4478 = vmatmul.mubr.msk.f32.gmra.mxu1 %vm396_vm1, %v6769_v12  ;;  %v6817_v59 = vld [vmem:[#allocation25_spill] sm:$0xff] }
 0x106   : > { %v832_v15 = vadd.f32 %v4095_v1, %v5868_v4  ;;  %4480 = vmatprep.mubr.msk.f32.mxu1 %vm396_vm1, %v6815_v60  ;;  %4538 = vmatprep.mubr.msk.f32.mxu0 %vm396_vm1, %v5271_v38 }
 0x107   : > { %v6004_v35 = vpop.f32.mrf.mxu0  ;;  %v826_v18 = vpop.f32.mrf.mxu1 }
 0x108   : > { %v827_v51 = vadd.f32 %v826_v18, %v5880_v63 }
 0x109   : > { %v4098_v24 = vpop.f32.mrf.mxu1  ;;  %v4156_v27 = vpop.f32.mrf.mxu0  ;;  %4481 = vmatmul.mubr.msk.f32.gmra.mxu1 %vm396_vm1, %v6816_v19  ;;  %4539 = vmatmul.mubr.msk.f32.vlgmr.msra.gmra.mxu0 %vm396_vm1, %v6791_v11 }
 0x10a   : > { %v842_v12 = vadd.f32 %v4098_v24, %v5884_v57  ;;  %v6012_v4 = vadd.f32 %v4156_v27, %v822_v30  ;;  %4483 = vmatprep.mubr.msk.f32.mxu1 %vm396_vm1, %v6772_v44  ;;  %4541 = vmatprep.mubr.msk.f32.mxu0 %vm396_vm1, %v5294_v23 }
 0x10b   : > { %v836_v38 = vpop.f32.mrf.mxu1  ;;  %v1195_v63 = vpop.f32.mrf.mxu0 }
 0x10c   : > { %v837_v1 = vadd.f32 %v836_v38, %v5896_v43  ;;  %v6019_v60 = vadd.f32 %v1195_v63, %v817_v55 }
 0x10d   : > { %v4101_v19 = vpop.f32.mrf.mxu1  ;;  %v4159_v18 = vpop.f32.mrf.mxu0  ;;  %4484 = vmatmul.mubr.msk.f32.gmra.mxu1 %vm396_vm1, %v6817_v59  ;;  %4542 = vmatmul.mubr.msk.f32.gmra.mxu0 %vm396_vm1, %v6792_v54 }
 0x10e   : > { %v852_v11 = vadd.f32 %v4101_v19, %v5900_v41  ;;  %v6026_v44 = vadd.f32 %v4159_v18, %v832_v15  ;;  %4486 = vmatprep.mubr.msk.f32.mxu1 %vm396_vm1, %v6774_v47  ;;  %4544 = vmatprep.mubr.msk.f32.mxu0 %vm396_vm1, %v5317_v50 }
 0x10f   : > { %v846_v23 = vpop.f32.mrf.mxu1  ;;  %v1205_v43 = vpop.f32.mrf.mxu0 }
 0x110   : > { %v847_v27 = vadd.f32 %v846_v23, %v5914_v25  ;;  %v6033_v57 = vadd.f32 %v1205_v43, %v827_v51 }
 0x111   : > { %v4104_v55 = vpop.f32.mrf.mxu1  ;;  %v4162_v30 = vpop.f32.mrf.mxu0  ;;  %4487 = vmatmul.mubr.msk.f32.gmra.mxu1 %vm396_vm1, %v5173_v58  ;;  %4545 = vmatmul.mubr.msk.f32.gmra.mxu0 %vm396_vm1, %v6793_v45 }
 0x112   : > { %v862_v54 = vadd.f32 %v4104_v55, %v5918_v37  ;;  %v6040_v47 = vadd.f32 %v4162_v30, %v842_v12  ;;  %4489 = vmatprep.mubr.msk.f32.mxu1 %vm396_vm1, %v5182_v17  ;;  %4547 = vmatprep.mubr.msk.f32.mxu0 %vm396_vm1, %v5340_v13  ;;  %v6820_v55 = vld [vmem:[#allocation11_spill] sm:$0xff] }
 0x113   : > { %v856_v50 = vpop.f32.mrf.mxu1  ;;  %v1215_v25 = vpop.f32.mrf.mxu0 }
 0x114   : > { %v857_v41 = vadd.f32 %v856_v50, %v5931_v26  ;;  %v6047_v59 = vadd.f32 %v1215_v25, %v837_v1  ;;  %v6821_v50 = vld [vmem:[#allocation22_spill] sm:$0xff] }
 0x115   : > { %v4107_v58 = vpop.f32.mrf.mxu1  ;;  %v4165_v15 = vpop.f32.mrf.mxu0  ;;  %4490 = vmatmul.mubr.msk.f32.gmra.mxu1 %vm396_vm1, %v5199_v56  ;;  %4548 = vmatmul.mubr.msk.f32.gmra.mxu0 %vm396_vm1, %v6794_v49 }
 0x116   : > { %v872_v37 = vadd.f32 %v4107_v58, %v5938_v22  ;;  %v6054_v17 = vadd.f32 %v4165_v15, %v852_v11  ;;  %4492 = vmatprep.mubr.msk.f32.mxu1 %vm396_vm1, %v5205_v40  ;;  %4550 = vmatprep.mubr.msk.f32.mxu0 %vm396_vm1, %v5363_v2  ;;  %v6824_v58 = vld [vmem:[#allocation24_spill] sm:$0xff] }
 0x117   : > { %v866_v13 = vpop.f32.mrf.mxu1  ;;  %v1225_v45 = vpop.f32.mrf.mxu0  ;;  %v6825_v15 = vld [vmem:[#allocation40_spill] sm:$0xff] }
 0x118   : > { %v867_v26 = vadd.f32 %v866_v13, %v5953_v28  ;;  %v6061_v51 = vadd.f32 %v1225_v45, %v847_v27  ;;  %v6826_v45 = vld [vmem:[#allocation15_spill] sm:$0xff] }
 0x119   : > { %v4110_v56 = vpop.f32.mrf.mxu1  ;;  %v4168_v24 = vpop.f32.mrf.mxu0  ;;  %4493 = vmatmul.mubr.msk.f32.gmra.mxu1 %vm396_vm1, %v5225_v5  ;;  %4551 = vmatmul.mubr.msk.f32.gmra.mxu0 %vm396_vm1, %v6795_v62 }
 0x11a   : > { %v882_v22 = vadd.f32 %v4110_v56, %v5957_v46  ;;  %v6068_v40 = vadd.f32 %v4168_v24, %v862_v54  ;;  %4495 = vmatprep.mubr.msk.f32.mxu1 %vm396_vm1, %v6775_v9  ;;  %4553 = vmatprep.mubr.msk.f32.mxu0 %vm396_vm1, %v5386_v6 }
 0x11b   : > { %v876_v2 = vpop.f32.mrf.mxu1  ;;  %v1235_v49 = vpop.f32.mrf.mxu0 }
 0x11c   : > { %v877_v28 = vadd.f32 %v876_v2, %v5969_v3  ;;  %v6075_v12 = vadd.f32 %v1235_v49, %v857_v41  ;;  %v6827_v2 = vld [vmem:[#allocation26_spill] sm:$0xff]  ;;  %v6828_v49 = vld [vmem:[#allocation41_spill] sm:$0xff] }
 0x11d   : > { %v4113_v5 = vpop.f32.mrf.mxu1  ;;  %v4171_v38 = vpop.f32.mrf.mxu0  ;;  %4496 = vmatmul.mubr.msk.f32.gmra.mxu1 %vm396_vm1, %v6776_v20  ;;  %4554 = vmatmul.mubr.msk.f32.gmra.mxu0 %vm396_vm1, %v5407_v0 }
 0x11e   : > { %v892_v62 = vadd.f32 %v4113_v5, %v5976_v48  ;;  %v6082_v9 = vadd.f32 %v4171_v38, %v872_v37  ;;  %4498 = vmatprep.mubr.msk.f32.mxu1 %vm396_vm1, %v6777_v21  ;;  %4556 = vmatprep.mubr.msk.f32.mxu0 %vm396_vm1, %v5411_v16 }
 0x11f   : > { %v886_v6 = vpop.f32.mrf.mxu1  ;;  %v1245_v46 = vpop.f32.mrf.mxu0 }
 0x120   : > { %v887_v3 = vadd.f32 %v886_v6, %v5990_v39  ;;  %v6089_v63 = vadd.f32 %v1245_v46, %v867_v26  ;;  %v6831_v6 = vld [vmem:[#allocation42_spill] sm:$0xff] }
 0x121   : > { %v4116_v20 = vpop.f32.mrf.mxu1  ;;  %v4174_v1 = vpop.f32.mrf.mxu0  ;;  %4499 = vmatmul.mubr.msk.f32.gmra.mxu1 %vm396_vm1, %v6778_v32  ;;  %4557 = vmatmul.mubr.msk.f32.gmra.mxu0 %vm396_vm1, %v5430_v42  ;;  %v6832_v46 = vld [vmem:[#allocation18_spill] sm:$0xff] }
 0x122   : > { %v902_v0 = vadd.f32 %v4116_v20, %v5993_v10  ;;  %v6096_v48 = vadd.f32 %v4174_v1, %v882_v22  ;;  %4501 = vmatprep.mubr.msk.f32.mxu1 %vm396_vm1, %v6779_v33  ;;  %4559 = vmatprep.mubr.msk.f32.mxu0 %vm396_vm1, %v6796_v34 }
 0x123   : > { %v896_v16 = vpop.f32.mrf.mxu1  ;;  %v1255_v21 = vpop.f32.mrf.mxu0 }
 0x124   : > { %v6102_v39 = vadd.f32 %v1255_v21, %v877_v28  ;;  %v6829_v28 = vld [vmem:[#allocation17_spill] sm:$0xff] }
 0x125   : > { %v4119_v19 = vpop.f32.mrf.mxu1  ;;  %v4177_v18 = vpop.f32.mrf.mxu0  ;;  %4502 = vmatmul.mubr.msk.f32.gmra.mxu1 %vm396_vm1, %v6780_v52  ;;  %4560 = vmatmul.mubr.msk.f32.gmra.mxu0 %vm396_vm1, %v5448_v14  ;;  %v897_v14 = vadd.f32 %v896_v16, %v6004_v35  ;;  %v6823_v35 = vld [vmem:[#allocation13_spill] sm:$0xff] }
 0x126   : > { %v912_v42 = vadd.f32 %v4119_v19, %v5854_v31  ;;  %v6109_v10 = vadd.f32 %v4177_v18, %v892_v62  ;;  %4504 = vmatprep.mubr.msk.f32.mxu1 %vm396_vm1, %v6781_v53  ;;  %4562 = vmatprep.mubr.msk.f32.mxu0 %vm396_vm1, %v6797_v61  ;;  %v6818_v61 = vld [vmem:[#allocation20_spill] sm:$0xff]  ;;  %v249_v21 = vld [vmem:[%s4815_s20 + $0x1a8] sm:$0x3]  ;;  %v6834_v19 = vld [vmem:[#allocation23_spill] sm:$0xff] }
 0x127   : > { %v906_v32 = vpop.f32.mrf.mxu1  ;;  %v1265_v33 = vpop.f32.mrf.mxu0  ;;  %v6830_v62 = vld [vmem:[#allocation28_spill] sm:$0xff] }
 0x128   : > { %v907_v34 = vadd.f32 %v906_v32, %v5866_v7  ;;  %v6116_v11 = vadd.f32 %v1265_v33, %v887_v3  ;;  %v6819_v7 = vld [vmem:[#allocation38_spill] sm:$0xff]  ;;  %v2482_v3 = vrot.slane %v6832_v46, 1 }
 0x129   : > { %v4122_v52 = vpop.f32.mrf.mxu1  ;;  %v4180_v23 = vpop.f32.mrf.mxu0  ;;  %4505 = vmatmul.mubr.msk.f32.gmra.mxu1 %vm396_vm1, %v6782_v8  ;;  %4563 = vmatmul.mubr.msk.f32.gmra.mxu0 %vm396_vm1, %v5465_v29 }
 0x12a   : > { %v922_v53 = vadd.f32 %v4122_v52, %v5870_v36  ;;  %v6124_v31 = vadd.f32 %v4180_v23, %v902_v0  ;;  %4507 = vmatprep.mubr.msk.f32.mxu1 %vm396_vm1, %v6818_v61  ;;  %4565 = vmatprep.mubr.msk.f32.mxu0 %vm396_vm1, %v6819_v7  ;;  %v6822_v36 = vld [vmem:[#allocation39_spill] sm:$0xff]  ;;  %v6833_v0 = vld [vmem:[#allocation30_spill] sm:$0xff]  ;;  %v6839_v7 = vld [vmem:[#allocation44_spill] sm:$0xff] }
 0x12b   : > { %v916_v43 = vpop.f32.mrf.mxu1  ;;  %v1275_v27 = vpop.f32.mrf.mxu0  ;;  %v2483_v16 = vrot.slane %v6833_v0, 1  ;;  %v6836_v52 = vld [vmem:[#allocation43_spill] sm:$0xff] }
 0x12c   : > { %v917_v30 = vadd.f32 %v916_v43, %v6820_v55  ;;  %v6131_v8 = vadd.f32 %v1275_v27, %v897_v14  ;;  %v6837_v23 = vld [vmem:[#allocation27_spill] sm:$0xff]  ;;  %v2485_v43 = vrot.slane %v249_v21, 1 }
 0x12d   : > { %v4125_v54 = vpop.f32.mrf.mxu1  ;;  %v4183_v29 = vpop.f32.mrf.mxu0  ;;  %4508 = vmatmul.mubr.msk.f32.gmra.mxu1 %vm396_vm1, %v6821_v50  ;;  %4566 = vmatmul.mubr.msk.f32.gmra.mxu0 %vm396_vm1, %v6822_v36  ;;  %v6838_v61 = vld [vmem:[#allocation7_spill] sm:$0xff] }
 0x12e   : > { %v932_v25 = vadd.f32 %v4125_v54, %v6823_v35  ;;  %v6138_v41 = vadd.f32 %v4183_v29, %v912_v42  ;;  %4510 = vmatprep.mubr.msk.f32.mxu1 %vm396_vm1, %v6824_v58  ;;  %4568 = vmatprep.mubr.msk.f32.mxu0 %vm396_vm1, %v6825_v15  ;;  %v6840_v54 = vld [vmem:[#allocation5_spill] sm:$0xff]  ;;  %v6843_v15 = vld [vmem:[#allocation8_spill] sm:$0xff] }
 0x12f   : > { %v926_v37 = vpop.f32.mrf.mxu1  ;;  %v1285_v13 = vpop.f32.mrf.mxu0  ;;  %v6841_v58 = vld [vmem:[#allocation9_spill] sm:$0xff] }
 0x130   : > { %v927_v26 = vadd.f32 %v926_v37, %v6826_v45  ;;  %v6145_v56 = vadd.f32 %v1285_v13, %v907_v34  ;;  %v6835_v34 = vld [vmem:[#allocation29_spill] sm:$0xff]  ;;  %v6844_v45 = vld [vmem:[#allocation46_spill] sm:$0xff] }
 0x131   : > { %v4128_v24 = vpop.f32.mrf.mxu1  ;;  %v4186_v22 = vpop.f32.mrf.mxu0  ;;  %4511 = vmatmul.mubr.msk.f32.gmra.mxu1 %vm396_vm1, %v6827_v2  ;;  %4569 = vmatmul.mubr.msk.f32.gmra.mxu0 %vm396_vm1, %v6828_v49  ;;  %v2758_v49 = vrot.slane %v6833_v0, 2 }
 0x132   : > { %v942_v5 = vadd.f32 %v4128_v24, %v6829_v28  ;;  %v6152_v38 = vadd.f32 %v4186_v22, %v922_v53  ;;  %4513 = vmatprep.mubr.msk.f32.mxu1 %vm396_vm1, %v6830_v62  ;;  %4571 = vmatprep.mubr.msk.f32.mxu0 %vm396_vm1, %v6831_v6  ;;  %v2757_v24 = vrot.slane %v6832_v46, 2  ;;  %v6845_v28 = vld [vmem:[#allocation12_spill] sm:$0xff]  ;;  %v6848_v46 = vld [vmem:[#allocation6_spill] sm:$0xff] }
 0x133   : > { %v936_v20 = vpop.f32.mrf.mxu1  ;;  %v1295_v1 = vpop.f32.mrf.mxu0 }
 0x134   : > { %v937_v18 = vadd.f32 %v936_v20, %v6834_v19  ;;  %v6162_v42 = vadd.f32 %v1295_v1, %v917_v30  ;;  %v2484_v30 = vsel %vm306_vm0, %v2482_v3, %v2483_v16  ;;  %v6846_v20 = vld [vmem:[#allocation47_spill] sm:$0xff]  ;;  %v6847_v1 = vld [vmem:[#allocation14_spill] sm:$0xff] }
 0x135   : > { %v4131_v32 = vpop.f32.mrf.mxu1  ;;  %v4189_v33 = vpop.f32.mrf.mxu0  ;;  %4514 = vmatmul.mubr.msk.f32.gmra.mxu1 %vm396_vm1, %v6835_v34  ;;  %4572 = vmatmul.mubr.msk.f32.gmra.mxu0 %vm396_vm1, %v6836_v52  ;;  %v6849_v34 = vld [vmem:[#allocation16_spill] sm:$0xff] }
 0x136   : > { %v952_v14 = vadd.f32 %v4131_v32, %v6837_v23  ;;  %v6169_v53 = vadd.f32 %v4189_v33, %v932_v25  ;;  %4516 = vmatprep.mubr.msk.f32.mxu1 %vm396_vm1, %v6838_v61  ;;  %4574 = vmatprep.mubr.msk.f32.mxu0 %vm396_vm1, %v6839_v7  ;;  %v6842_v25 = vld [vmem:[#allocation45_spill] sm:$0xff]  ;;  %v2760_v32 = vrot.slane %v249_v21, 2 }
 0x137   : > { %v946_v27 = vpop.f32.mrf.mxu1  ;;  %v1305_v55 = vpop.f32.mrf.mxu0 }
 0x138   : > { %v947_v29 = vadd.f32 %v946_v27, %v6840_v54  ;;  %v6177_v50 = vadd.f32 %v1305_v55, %v927_v26  ;;  %v2486_v26 = vsel %vm306_vm0, %v2483_v16, %v2485_v43  ;;  %v6850_v43 = vld [vmem:[#allocation10_spill] sm:$0xff]  ;;  %v2761_v21 = vsel %vm975_vm2, %v2758_v49, %v2760_v32 }
 0x139   : > { %v4134_v36 = vpop.f32.mrf.mxu1  ;;  %v4192_v35 = vpop.f32.mrf.mxu0  ;;  %4517 = vmatmul.mubr.msk.f32.gmra.mxu1 %vm396_vm1, %v6841_v58  ;;  %4575 = vmatmul.mubr.msk.f32.gmra.mxu0 %vm396_vm1, %v6842_v25 }
 0x13a   : > { %v962_v37 = vadd.f32 %v4134_v36, %v6843_v15  ;;  %v6184_v13 = vadd.f32 %v4192_v35, %v942_v5  ;;  %4519 = vmatprep.mubr.msk.f32.mxu1 %vm396_vm1, %v2484_v30  ;;  %4577 = vmatprep.mubr.msk.f32.mxu0 %vm396_vm1, %v6844_v45 }
 0x13b   : > { %v956_v22 = vpop.f32.mrf.mxu1  ;;  %v1315_v2 = vpop.f32.mrf.mxu0 }
 0x13c   : > { %v957_v62 = vadd.f32 %v956_v22, %v6845_v28  ;;  %v6193_v6 = vadd.f32 %v1315_v2, %v937_v18  ;;  %v2759_v18 = vsel %vm975_vm2, %v2757_v24, %v2758_v49 }
 0x13d   : > { %v4137_v3 = vpop.f32.mrf.mxu1  ;;  %v4195_v5 = vpop.f32.mrf.mxu0  ;;  %4520 = vmatmul.mubr.msk.f32.gmra.mxu1 %vm396_vm1, %v2486_v26  ;;  %4578 = vmatmul.mubr.msk.f32.gmra.mxu0 %vm396_vm1, %v6846_v20 }
 0x13e   : > { %v972_v19 = vadd.f32 %v4137_v3, %v6847_v1  ;;  %v6199_v16 = vadd.f32 %v4195_v5, %v952_v14  ;;  %4580 = vmatprep.mubr.msk.f32.mxu0 %vm396_vm1, %v6848_v46 }
 0x13f   : > { %v966_v0 = vpop.f32.mrf.mxu1  ;;  %v1325_v33 = vpop.f32.mrf.mxu0 }
 0x140   : > { %v967_v52 = vadd.f32 %v966_v0, %v6849_v34  ;;  %v6205_v23 = vadd.f32 %v1325_v33, %v947_v29 }
 0x141   : > { %v4198_v61 = vpop.f32.mrf.mxu0  ;;  %v4220_v7 = vpop.f32.mrf.mxu1  ;;  %4581 = vmatmul.mubr.msk.f32.gmra.mxu0 %vm396_vm1, %v6850_v43 }
 0x142   : > { %v6209_v27 = vadd.f32 %v4198_v61, %v962_v37  ;;  %v1627_v14 = vadd.f32 %v4220_v7, %v6012_v4  ;;  %4583 = vmatprep.mubr.msk.f32.mxu0 %vm396_vm1, %v2759_v18 }
 0x143   : > { %v1335_v55 = vpop.f32.mrf.mxu0  ;;  %v1467_v30 = vpop.f32.mrf.mxu1 }
 0x144   : > { %v6214_v54 = vadd.f32 %v1335_v55, %v957_v62  ;;  %v1626_v29 = vadd.f32 %v1467_v30, %v6019_v60 }
 0x145   : > { %v4201_v36 = vpop.f32.mrf.mxu0  ;;  %v4223_v35 = vpop.f32.mrf.mxu1  ;;  %4584 = vmatmul.mubr.msk.f32.gmra.mxu0 %vm396_vm1, %v2761_v21 }
 0x146   : > { %v6218_v58 = vadd.f32 %v4201_v36, %v972_v19  ;;  %v1629_v25 = vadd.f32 %v4223_v35, %v6026_v44 }
 0x147   : > { %v1345_v15 = vpop.f32.mrf.mxu0  ;;  %v1477_v4 = vpop.f32.mrf.mxu1 }
 0x148   : > { %v6221_v37 = vadd.f32 %v1345_v15, %v967_v52  ;;  %v1628_v45 = vadd.f32 %v1477_v4, %v6033_v57 }
 0x149   : > { %v4226_v26 = vpop.f32.mrf.mxu1  ;;  %v4284_v24 = vpop.f32.mrf.mxu0 }
 0x14a   : > { %v1631_v22 = vadd.f32 %v4226_v26, %v6040_v47  ;;  %v6225_v2 = vadd.f32 %v4284_v24, %v1627_v14 }
 0x14b   : > { %v1487_v60 = vpop.f32.mrf.mxu1  ;;  %v1743_v49 = vpop.f32.mrf.mxu0 }
 0x14c   : > { %v1630_v28 = vadd.f32 %v1487_v60, %v6047_v59  ;;  %v6228_v62 = vadd.f32 %v1743_v49, %v1626_v29 }
 0x14d   : > { %v4229_v3 = vpop.f32.mrf.mxu1  ;;  %v4287_v44 = vpop.f32.mrf.mxu0 }
 0x14e   : > { %v1633_v5 = vadd.f32 %v4229_v3, %v6054_v17  ;;  %v6231_v20 = vadd.f32 %v4287_v44, %v1629_v25 }
 0x14f   : > { %v1497_v1 = vpop.f32.mrf.mxu1  ;;  %v1753_v57 = vpop.f32.mrf.mxu0 }
 0x150   : > { %v1632_v19 = vadd.f32 %v1497_v1, %v6061_v51  ;;  %v6234_v46 = vadd.f32 %v1753_v57, %v1628_v45 }
 0x151   : > { %v4232_v47 = vpop.f32.mrf.mxu1  ;;  %v4290_v32 = vpop.f32.mrf.mxu0 }
 0x152   : > { %v1635_v0 = vadd.f32 %v4232_v47, %v6068_v40  ;;  %v6237_v33 = vadd.f32 %v4290_v32, %v1631_v22 }
 0x153   : > { %v1507_v59 = vpop.f32.mrf.mxu1  ;;  %v1763_v18 = vpop.f32.mrf.mxu0 }
 0x154   : > { %v1634_v34 = vadd.f32 %v1507_v59, %v6075_v12  ;;  %v6240_v52 = vadd.f32 %v1763_v18, %v1630_v28 }
 0x155   : > { %v4235_v17 = vpop.f32.mrf.mxu1  ;;  %v4293_v61 = vpop.f32.mrf.mxu0 }
 0x156   : > { %v1637_v7 = vadd.f32 %v4235_v17, %v6082_v9  ;;  %v6243_v43 = vadd.f32 %v4293_v61, %v1633_v5 }
 0x157   : > { %v1517_v51 = vpop.f32.mrf.mxu1  ;;  %v1773_v14 = vpop.f32.mrf.mxu0 }
 0x158   : > { %v1636_v21 = vadd.f32 %v1517_v51, %v6089_v63  ;;  %v6246_v55 = vadd.f32 %v1773_v14, %v1632_v19 }
 0x159   : > { %v4238_v40 = vpop.f32.mrf.mxu1  ;;  %v4296_v30 = vpop.f32.mrf.mxu0 }
 0x15a   : > { %v1639_v29 = vadd.f32 %v4238_v40, %v6096_v48  ;;  %v6249_v36 = vadd.f32 %v4296_v30, %v1635_v0 }
 0x15b   : > { %v1527_v12 = vpop.f32.mrf.mxu1  ;;  %v1783_v35 = vpop.f32.mrf.mxu0 }
 0x15c   : > { %v1638_v25 = vadd.f32 %v1527_v12, %v6102_v39  ;;  %v6252_v15 = vadd.f32 %v1783_v35, %v1634_v34 }
 0x15d   : > { %v4241_v9 = vpop.f32.mrf.mxu1  ;;  %v4299_v4 = vpop.f32.mrf.mxu0 }
 0x15e   : > { %v1641_v45 = vadd.f32 %v4241_v9, %v6109_v10  ;;  %v6255_v26 = vadd.f32 %v4299_v4, %v1637_v7 }
 0x15f   : > { %v1537_v63 = vpop.f32.mrf.mxu1  ;;  %v1793_v24 = vpop.f32.mrf.mxu0 }
 0x160   : > { %v1640_v22 = vadd.f32 %v1537_v63, %v6116_v11  ;;  %v6258_v60 = vadd.f32 %v1793_v24, %v1636_v21 }
 0x161   : > { %v4244_v48 = vpop.f32.mrf.mxu1  ;;  %v4302_v49 = vpop.f32.mrf.mxu0 }
 0x162   : > { %v1643_v28 = vadd.f32 %v4244_v48, %v6124_v31  ;;  %v6261_v3 = vadd.f32 %v4302_v49, %v1639_v29 }
 0x163   : > { %v1547_v39 = vpop.f32.mrf.mxu1  ;;  %v1803_v44 = vpop.f32.mrf.mxu0 }
 0x164   : > { %v1642_v5 = vadd.f32 %v1547_v39, %v6131_v8  ;;  %v6264_v1 = vadd.f32 %v1803_v44, %v1638_v25 }
 0x165   : > { %v4247_v10 = vpop.f32.mrf.mxu1  ;;  %v4305_v57 = vpop.f32.mrf.mxu0 }
 0x166   : > { %v1645_v19 = vadd.f32 %v4247_v10, %v6138_v41  ;;  %v6267_v47 = vadd.f32 %v4305_v57, %v1641_v45 }
 0x167   : > { %v1557_v11 = vpop.f32.mrf.mxu1  ;;  %v1813_v32 = vpop.f32.mrf.mxu0 }
 0x168   : > { %v1644_v0 = vadd.f32 %v1557_v11, %v6145_v56  ;;  %v6270_v59 = vadd.f32 %v1813_v32, %v1640_v22 }
 0x169   : > { %v4250_v31 = vpop.f32.mrf.mxu1  ;;  %v4308_v18 = vpop.f32.mrf.mxu0 }
 0x16a   : > { %v1647_v34 = vadd.f32 %v4250_v31, %v6152_v38  ;;  %v6273_v17 = vadd.f32 %v4308_v18, %v1643_v28 }
 0x16b   : > { %v1567_v8 = vpop.f32.mrf.mxu1  ;;  %v1823_v61 = vpop.f32.mrf.mxu0 }
 0x16c   : > { %v1646_v7 = vadd.f32 %v1567_v8, %v6162_v42  ;;  %v6276_v51 = vadd.f32 %v1823_v61, %v1642_v5 }
 0x16d   : > { %v4253_v41 = vpop.f32.mrf.mxu1  ;;  %v4311_v14 = vpop.f32.mrf.mxu0 }
 0x16e   : > { %v1649_v21 = vadd.f32 %v4253_v41, %v6169_v53  ;;  %v6279_v40 = vadd.f32 %v4311_v14, %v1645_v19 }
 0x16f   : > { %v1577_v56 = vpop.f32.mrf.mxu1  ;;  %v1833_v30 = vpop.f32.mrf.mxu0 }
 0x170   : > { %v1648_v29 = vadd.f32 %v1577_v56, %v6177_v50  ;;  %v6282_v12 = vadd.f32 %v1833_v30, %v1644_v0 }
 0x171   : > { %v4256_v38 = vpop.f32.mrf.mxu1  ;;  %v4314_v35 = vpop.f32.mrf.mxu0 }
 0x172   : > { %v1651_v25 = vadd.f32 %v4256_v38, %v6184_v13  ;;  %v6285_v9 = vadd.f32 %v4314_v35, %v1647_v34 }
 0x173   : > { %v1587_v42 = vpop.f32.mrf.mxu1  ;;  %v1843_v4 = vpop.f32.mrf.mxu0 }
 0x174   : > { %v1650_v45 = vadd.f32 %v1587_v42, %v6193_v6  ;;  %v6288_v63 = vadd.f32 %v1843_v4, %v1646_v7 }
 0x175   : > { %v4259_v53 = vpop.f32.mrf.mxu1  ;;  %v4317_v24 = vpop.f32.mrf.mxu0 }
 0x176   : > { %v1653_v22 = vadd.f32 %v4259_v53, %v6199_v16  ;;  %v6291_v48 = vadd.f32 %v4317_v24, %v1649_v21 }
 0x177   : > { %v1597_v50 = vpop.f32.mrf.mxu1  ;;  %v1853_v49 = vpop.f32.mrf.mxu0 }
 0x178   : > { %v1652_v28 = vadd.f32 %v1597_v50, %v6205_v23  ;;  %v6294_v39 = vadd.f32 %v1853_v49, %v1648_v29 }
 0x179   : > { %v4262_v13 = vpop.f32.mrf.mxu1  ;;  %v4320_v44 = vpop.f32.mrf.mxu0 }
 0x17a   : > { %v1655_v5 = vadd.f32 %v4262_v13, %v6209_v27  ;;  %v6297_v10 = vadd.f32 %v4320_v44, %v1651_v25 }
 0x17b   : > { %v1607_v6 = vpop.f32.mrf.mxu1  ;;  %v1863_v57 = vpop.f32.mrf.mxu0 }
 0x17c   : > { %v1654_v19 = vadd.f32 %v1607_v6, %v6214_v54  ;;  %v6300_v11 = vadd.f32 %v1863_v57, %v1650_v45 }
 0x17d   : > { %v4265_v16 = vpop.f32.mrf.mxu1  ;;  %v4323_v32 = vpop.f32.mrf.mxu0 }
 0x17e   : > { %v1657_v0 = vadd.f32 %v4265_v16, %v6218_v58  ;;  %v6303_v31 = vadd.f32 %v4323_v32, %v1653_v22 }
 0x17f   : > { %v1617_v23 = vpop.f32.mrf.mxu1  ;;  %v1873_v18 = vpop.f32.mrf.mxu0 }
 0x180   : > { %v1656_v34 = vadd.f32 %v1617_v23, %v6221_v37  ;;  %v6306_v8 = vadd.f32 %v1873_v18, %v1652_v28 }
 0x181   : > { %v4326_v27 = vpop.f32.mrf.mxu0  ;;  %v4348_v61 = vpop.f32.mrf.mxu1 }
 0x182   : > { %v6308_v7 = vadd.f32 %v4326_v27, %v1655_v5  ;;  %v2178_v54 = vadd.f32 %v4348_v61, %v6225_v2 }
 0x183   : > { %v1883_v41 = vpop.f32.mrf.mxu0  ;;  %v2018_v14 = vpop.f32.mrf.mxu1 }
 0x184   : > { %v6311_v21 = vadd.f32 %v1883_v41, %v1654_v19  ;;  %v2177_v58 = vadd.f32 %v2018_v14, %v6228_v62 }
 0x185   : > { %v4329_v56 = vpop.f32.mrf.mxu0  ;;  %v4351_v30 = vpop.f32.mrf.mxu1 }
 0x186   : > { %v6314_v29 = vadd.f32 %v4329_v56, %v1657_v0  ;;  %v2180_v37 = vadd.f32 %v4351_v30, %v6231_v20 }
 0x187   : > { %v1893_v38 = vpop.f32.mrf.mxu0  ;;  %v2028_v35 = vpop.f32.mrf.mxu1 }
 0x188   : > { %v6317_v25 = vadd.f32 %v1893_v38, %v1656_v34  ;;  %v2179_v42 = vadd.f32 %v2028_v35, %v6234_v46 }
 0x189   : > { %v4354_v4 = vpop.f32.mrf.mxu1  ;;  %v4412_v2 = vpop.f32.mrf.mxu0 }
 0x18a   : > { %v2182_v45 = vadd.f32 %v4354_v4, %v6237_v33  ;;  %v6321_v53 = vadd.f32 %v4412_v2, %v2178_v54 }
 0x18b   : > { %v2038_v24 = vpop.f32.mrf.mxu1  ;;  %v2290_v62 = vpop.f32.mrf.mxu0 }
 0x18c   : > { %v2181_v22 = vadd.f32 %v2038_v24, %v6240_v52  ;;  %v6324_v50 = vadd.f32 %v2290_v62, %v2177_v58 }
 0x18d   : > { %v4357_v49 = vpop.f32.mrf.mxu1  ;;  %v4415_v20 = vpop.f32.mrf.mxu0 }
 0x18e   : > { %v2184_v28 = vadd.f32 %v4357_v49, %v6243_v43  ;;  %v6327_v13 = vadd.f32 %v4415_v20, %v2180_v37 }
 0x18f   : > { %v2048_v44 = vpop.f32.mrf.mxu1  ;;  %v2300_v46 = vpop.f32.mrf.mxu0 }
 0x190   : > { %v2183_v5 = vadd.f32 %v2048_v44, %v6246_v55  ;;  %v6330_v6 = vadd.f32 %v2300_v46, %v2179_v42 }
 0x191   : > { %v4360_v33 = vpop.f32.mrf.mxu1  ;;  %v4418_v57 = vpop.f32.mrf.mxu0 }
 0x192   : > { %v2186_v19 = vadd.f32 %v4360_v33, %v6249_v36  ;;  %v6333_v16 = vadd.f32 %v4418_v57, %v2182_v45 }
 0x193   : > { %v2058_v52 = vpop.f32.mrf.mxu1  ;;  %v2310_v32 = vpop.f32.mrf.mxu0 }
 0x194   : > { %v2185_v0 = vadd.f32 %v2058_v52, %v6252_v15  ;;  %v6336_v23 = vadd.f32 %v2310_v32, %v2181_v22 }
 0x195   : > { %v4363_v43 = vpop.f32.mrf.mxu1  ;;  %v4421_v18 = vpop.f32.mrf.mxu0 }
 0x196   : > { %v2188_v34 = vadd.f32 %v4363_v43, %v6255_v26  ;;  %v6339_v27 = vadd.f32 %v4421_v18, %v2184_v28 }
 0x197   : > { %v2068_v55 = vpop.f32.mrf.mxu1  ;;  %v2320_v61 = vpop.f32.mrf.mxu0 }
 0x198   : > { %v2187_v54 = vadd.f32 %v2068_v55, %v6258_v60  ;;  %v6342_v41 = vadd.f32 %v2320_v61, %v2183_v5 }
 0x199   : > { %v4366_v36 = vpop.f32.mrf.mxu1  ;;  %v4424_v14 = vpop.f32.mrf.mxu0 }
 0x19a   : > { %v2190_v58 = vadd.f32 %v4366_v36, %v6261_v3  ;;  %v6345_v56 = vadd.f32 %v4424_v14, %v2186_v19 }
 0x19b   : > { %v2078_v15 = vpop.f32.mrf.mxu1  ;;  %v2330_v30 = vpop.f32.mrf.mxu0 }
 0x19c   : > { %v2189_v37 = vadd.f32 %v2078_v15, %v6264_v1  ;;  %v6348_v38 = vadd.f32 %v2330_v30, %v2185_v0 }
 0x19d   : > { %v4369_v26 = vpop.f32.mrf.mxu1  ;;  %v4427_v35 = vpop.f32.mrf.mxu0 }
 0x19e   : > { %v2192_v42 = vadd.f32 %v4369_v26, %v6267_v47  ;;  %v6351_v4 = vadd.f32 %v4427_v35, %v2188_v34 }
 0x19f   : > { %v2088_v60 = vpop.f32.mrf.mxu1  ;;  %v2340_v2 = vpop.f32.mrf.mxu0 }
 0x1a0   : > { %v2191_v45 = vadd.f32 %v2088_v60, %v6270_v59  ;;  %v6354_v24 = vadd.f32 %v2340_v2, %v2187_v54 }
 0x1a1   : > { %v4372_v3 = vpop.f32.mrf.mxu1  ;;  %v4430_v62 = vpop.f32.mrf.mxu0 }
 0x1a2   : > { %v2194_v22 = vadd.f32 %v4372_v3, %v6273_v17  ;;  %v6357_v49 = vadd.f32 %v4430_v62, %v2190_v58  ;;  %v6371_v17 = vld [vmem:[%s6634_s3] sm:$0xff] }
 0x1a3   : > { %v2098_v1 = vpop.f32.mrf.mxu1  ;;  %v2350_v20 = vpop.f32.mrf.mxu0  ;;  %6851 = vst [vmem:[#allocation31_spill] sm:$0xff] %v6371_v17  ;;  %v3105_v0 = vcombine.high %v6371_v17, %v6371_v17 }
 0x1a4   : > { %v2193_v28 = vadd.f32 %v2098_v1, %v6276_v51  ;;  %v6360_v44 = vadd.f32 %v2350_v20, %v2189_v37 }
 0x1a5   : > { %v4375_v47 = vpop.f32.mrf.mxu1  ;;  %v4433_v46 = vpop.f32.mrf.mxu0  ;;  %3171 = vmatprep.mubr.f32.mxu1 %v3105_v0 }
 0x1a6   : > { %v2196_v5 = vadd.f32 %v4375_v47, %v6279_v40  ;;  %v6363_v33 = vadd.f32 %v4433_v46, %v2192_v42 }
 0x1a7   : > { %v2108_v59 = vpop.f32.mrf.mxu1  ;;  %v2360_v57 = vpop.f32.mrf.mxu0 }
 0x1a8   : > { %v2195_v19 = vadd.f32 %v2108_v59, %v6282_v12  ;;  %v6366_v52 = vadd.f32 %v2360_v57, %v2191_v45 }
 0x1a9   : > { %v4378_v51 = vpop.f32.mrf.mxu1  ;;  %v4436_v32 = vpop.f32.mrf.mxu0 }
 0x1aa   : > { %v2198_v40 = vadd.f32 %v4378_v51, %v6285_v9  ;;  %v6376_v43 = vadd.f32 %v4436_v32, %v2194_v22 }
 0x1ab   : > { %v2118_v18 = vpop.f32.mrf.mxu1  ;;  %v2370_v34 = vpop.f32.mrf.mxu0 }
 0x1ac   : > { %6852 = vst [vmem:[#allocation32_spill] sm:$0xff] %v6376_v43  ;;  %v2197_v12 = vadd.f32 %v2118_v18, %v6288_v63  ;;  %v6379_v55 = vadd.f32 %v2370_v34, %v2193_v28 }
 0x1ad   : > { %v4381_v61 = vpop.f32.mrf.mxu1  ;;  %v4439_v54 = vpop.f32.mrf.mxu0 }
 0x1ae   : > { %6853 = vst [vmem:[#allocation33_spill] sm:$0xff] %v6379_v55  ;;  %v2200_v36 = vadd.f32 %v4381_v61, %v6291_v48  ;;  %v6382_v14 = vadd.f32 %v4439_v54, %v2196_v5 }
 0x1af   : > { %v2128_v58 = vpop.f32.mrf.mxu1  ;;  %v2380_v15 = vpop.f32.mrf.mxu0 }
 0x1b0   : > { %6854 = vst [vmem:[#allocation34_spill] sm:$0xff] %v6382_v14  ;;  %v2199_v30 = vadd.f32 %v2128_v58, %v6294_v39  ;;  %v6385_v9 = vadd.f32 %v2380_v15, %v2195_v19 }
 0x1b1   : > { %v4384_v37 = vpop.f32.mrf.mxu1  ;;  %v4442_v26 = vpop.f32.mrf.mxu0 }
 0x1b2   : > { %6855 = vst [vmem:[#allocation35_spill] sm:$0xff] %v6385_v9  ;;  %v2202_v35 = vadd.f32 %v4384_v37, %v6297_v10  ;;  %v6388_v42 = vadd.f32 %v4442_v26, %v2198_v40 }
 0x1b3   : > { %v2138_v63 = vpop.f32.mrf.mxu1  ;;  %v2390_v60 = vpop.f32.mrf.mxu0 }
 0x1b4   : > { %6856 = vst [vmem:[#allocation36_spill] sm:$0xff] %v6388_v42  ;;  %v2201_v2 = vadd.f32 %v2138_v63, %v6300_v11  ;;  %v6391_v45 = vadd.f32 %v2390_v60, %v2197_v12 }
 0x1b5   : > { %v4387_v48 = vpop.f32.mrf.mxu1  ;;  %v4445_v3 = vpop.f32.mrf.mxu0 }
 0x1b6   : > { %6857 = vst [vmem:[#allocation37_spill] sm:$0xff] %v6391_v45  ;;  %v2204_v62 = vadd.f32 %v4387_v48, %v6303_v31  ;;  %v6394_v22 = vadd.f32 %v4445_v3, %v2200_v36 }
 0x1b7   : > { %v2148_v39 = vpop.f32.mrf.mxu1  ;;  %v2400_v1 = vpop.f32.mrf.mxu0 }
 0x1b8   : > { %v2203_v20 = vadd.f32 %v2148_v39, %v6306_v8  ;;  %v6397_v28 = vadd.f32 %v2400_v1, %v2199_v30 }
 0x1b9   : > { %v4390_v10 = vpop.f32.mrf.mxu1  ;;  %v4448_v47 = vpop.f32.mrf.mxu0 }
 0x1ba   : > { %v2206_v46 = vadd.f32 %v4390_v10, %v6308_v7  ;;  %v6400_v5 = vadd.f32 %v4448_v47, %v2202_v35 }
 0x1bb   : > { %v2158_v11 = vpop.f32.mrf.mxu1  ;;  %v2410_v59 = vpop.f32.mrf.mxu0 }
 0x1bc   : > { %v2205_v57 = vadd.f32 %v2158_v11, %v6311_v21  ;;  %v6403_v19 = vadd.f32 %v2410_v59, %v2201_v2 }
 0x1bd   : > { %v6405_v31 = vpop.f32.mrf.mxu1  ;;  %v4451_v51 = vpop.f32.mrf.mxu0 }
 0x1be   : > { %v6407_v32 = vadd.f32 %v4451_v51, %v2204_v62  ;;  %v2208_v9 = vadd.f32 %v6405_v31, %v6314_v29 }
 0x1bf   : > { %v6409_v8 = vpop.f32.mrf.mxu1  ;;  %v2420_v0 = vpop.f32.mrf.mxu0 }
 0x1c0   : > { %v6411_v40 = vadd.f32 %v2420_v0, %v2203_v20 }
 0x1c1   : > { %v4454_v18 = vpop.f32.mrf.mxu0  ;;  %v4476_v7 = vpop.f32.mrf.mxu1 }
 0x1c2   : > { %v6413_v34 = vadd.f32 %v4454_v18, %v2206_v46  ;;  %v2726_v12 = vadd.f32 %v4476_v7, %v6321_v53 }
 0x1c3   : > { %v2430_v61 = vpop.f32.mrf.mxu0  ;;  %v2566_v21 = vpop.f32.mrf.mxu1 }
 0x1c4   : > { %v6416_v54 = vadd.f32 %v2430_v61, %v2205_v57  ;;  %v2725_v36 = vadd.f32 %v2566_v21, %v6324_v50 }
 0x1c5   : > { %v6419_v58 = vpop.f32.mrf.mxu0  ;;  %v4479_v15 = vpop.f32.mrf.mxu1 }
 0x1c6   : > { %v2728_v30 = vadd.f32 %v4479_v15, %v6327_v13  ;;  %v2480_v14 = vadd.f32 %v6419_v58, %v2208_v9 }
 0x1c7   : > { %v6422_v37 = vpop.f32.mrf.mxu0  ;;  %v2576_v26 = vpop.f32.mrf.mxu1 }
 0x1c8   : > { %v2727_v35 = vadd.f32 %v2576_v26, %v6330_v6 }
 0x1c9   : > { %v4482_v63 = vpop.f32.mrf.mxu1  ;;  %v4540_v60 = vpop.f32.mrf.mxu0 }
 0x1ca   : > { %v2730_v53 = vadd.f32 %v4482_v63, %v6333_v16  ;;  %v6426_v2 = vadd.f32 %v4540_v60, %v2726_v12 }
 0x1cb   : > { %v2586_v48 = vpop.f32.mrf.mxu1  ;;  %v2841_v3 = vpop.f32.mrf.mxu0 }
 0x1cc   : > { %6858 = vst [vmem:[#allocation19_spill] sm:$0xff] %v6426_v2  ;;  %v2729_v50 = vadd.f32 %v2586_v48, %v6336_v23  ;;  %v6429_v62 = vadd.f32 %v2841_v3, %v2725_v36 }
 0x1cd   : > { %v4485_v39 = vpop.f32.mrf.mxu1  ;;  %v4543_v1 = vpop.f32.mrf.mxu0 }
 0x1ce   : > { %6859 = vst [vmem:[#allocation21_spill] sm:$0xff] %v6429_v62  ;;  %v2732_v13 = vadd.f32 %v4485_v39, %v6339_v27  ;;  %v6432_v20 = vadd.f32 %v4543_v1, %v2728_v30 }
 0x1cf   : > { %v2596_v10 = vpop.f32.mrf.mxu1  ;;  %v2851_v6 = vpop.f32.mrf.mxu0 }
 0x1d0   : > { %6860 = vst [vmem:[#allocation25_spill] sm:$0xff] %v6432_v20  ;;  %v2731_v47 = vadd.f32 %v2596_v10, %v6342_v41  ;;  %v6435_v46 = vadd.f32 %v2851_v6, %v2727_v35 }
 0x1d1   : > { %v6437_v16 = vpop.f32.mrf.mxu1  ;;  %v4546_v11 = vpop.f32.mrf.mxu0 }
 0x1d2   : > { %6861 = vst [vmem:[#allocation20_spill] sm:$0xff] %v6435_v46  ;;  %v6439_v59 = vadd.f32 %v4546_v11, %v2730_v53 }
 0x1d3   : > { %v6441_v23 = vpop.f32.mrf.mxu1  ;;  %v2861_v57 = vpop.f32.mrf.mxu0 }
 0x1d4   : > { %6862 = vst [vmem:[#allocation38_spill] sm:$0xff] %v6439_v59  ;;  %v6443_v51 = vadd.f32 %v2861_v57, %v2729_v50 }
 0x1d5   : > { %v6445_v0 = vpop.f32.mrf.mxu1  ;;  %v4549_v27 = vpop.f32.mrf.mxu0 }
 0x1d6   : > { %6863 = vst [vmem:[#allocation11_spill] sm:$0xff] %v6443_v51  ;;  %v6447_v18 = vadd.f32 %v4549_v27, %v2732_v13 }
 0x1d7   : > { %v6449_v7 = vpop.f32.mrf.mxu1  ;;  %v2871_v41 = vpop.f32.mrf.mxu0 }
 0x1d8   : > { %6864 = vst [vmem:[#allocation22_spill] sm:$0xff] %v6447_v18  ;;  %v6451_v12 = vadd.f32 %v2871_v41, %v2731_v47 }
 0x1d9   : > { %v4494_v61 = vpop.f32.mrf.mxu1  ;;  %v6453_v21 = vpop.f32.mrf.mxu0 }
 0x1da   : > { %6865 = vst [vmem:[#allocation39_spill] sm:$0xff] %v6451_v12  ;;  %v2738_v29 = vadd.f32 %v4494_v61, %v6357_v49  ;;  %v2736_v61 = vadd.f32 %v6445_v0, %v6351_v4 }
 0x1db   : > { %v2626_v36 = vpop.f32.mrf.mxu1  ;;  %v6455_v15 = vpop.f32.mrf.mxu0 }
 0x1dd   : > { %v4497_v30 = vpop.f32.mrf.mxu1  ;;  %v6457_v26 = vpop.f32.mrf.mxu0 }
 0x1de   : > { %v2740_v12 = vadd.f32 %v4497_v30, %v6363_v33 }
 0x1df   : > { %v2636_v35 = vpop.f32.mrf.mxu1  ;;  %v6459_v63 = vpop.f32.mrf.mxu0 }
 0x1e0   : > { %v2739_v18 = vadd.f32 %v2636_v35, %v6366_v52 }
 0x1e1   : > { %v6461_v60 = vpop.f32.mrf.mxu1  ;;  %v4558_v53 = vpop.f32.mrf.mxu0 }
 0x1e2   : > { %6866 = vst [vmem:[#allocation13_spill] sm:$0xff] %v6461_v60 }
 0x1e3   : > { %v6463_v48 = vpop.f32.mrf.mxu1  ;;  %v2901_v3 = vpop.f32.mrf.mxu0 }
 0x1e4   : > { %6867 = vst [vmem:[#allocation24_spill] sm:$0xff] %v6463_v48 }
 0x1e5   : > { %v6465_v50 = vpop.f32.mrf.mxu1  ;;  %v4561_v39 = vpop.f32.mrf.mxu0 }
 0x1e6   : > { %6868 = vst [vmem:[#allocation40_spill] sm:$0xff] %v6465_v50  ;;  %v2207_v50 = vadd.f32 %v6409_v8, %v6317_v25  ;;  %v6510_v25 = vld [vmem:[%s6633_s2] ss:$0 sm:$0xff] }
 0x1e7   : > { %v6467_v1 = vpop.f32.mrf.mxu1  ;;  %v2911_v13 = vpop.f32.mrf.mxu0 }
 0x1e8   : > { %6869 = vst [vmem:[#allocation15_spill] sm:$0xff] %v6467_v1  ;;  %v3014_v31 = vadd.f32 %v2911_v13, %v2739_v18 }
 0x1e9   : > { %v6469_v10 = vpop.f32.mrf.mxu1  ;;  %v6471_v6 = vpop.f32.mrf.mxu0 }
 0x1ea   : > { %6870 = vst [vmem:[#allocation26_spill] sm:$0xff] %v6469_v10  ;;  %6871 = vst [vmem:[#allocation41_spill] sm:$0xff] %v6471_v6 }
 0x1eb   : > { %v6473_v47 = vpop.f32.mrf.mxu1  ;;  %v6475_v11 = vpop.f32.mrf.mxu0 }
 0x1ec   : > { %6872 = vst [vmem:[#allocation17_spill] sm:$0xff] %v6473_v47  ;;  %6873 = vst [vmem:[#allocation28_spill] sm:$0xff] %v6475_v11 }
 0x1ed   : > { %v6477_v57 = vpop.f32.mrf.mxu1  ;;  %v6479_v27 = vpop.f32.mrf.mxu0 }
 0x1ee   : > { %6874 = vst [vmem:[#allocation42_spill] sm:$0xff] %v6479_v27 }
 0x1ef   : > { %v6481_v41 = vpop.f32.mrf.mxu1  ;;  %v6483_v17 = vpop.f32.mrf.mxu0 }
 0x1f0   : > { %6875 = vst [vmem:[#allocation18_spill] sm:$0xff] %v6483_v17 }
 0x1f1   : > { %v4512_v62 = vpop.f32.mrf.mxu1  ;;  %v6485_v2 = vpop.f32.mrf.mxu0 }
 0x1f2   : > { %6876 = vst [vmem:[#allocation30_spill] sm:$0xff] %v6485_v2  ;;  %v3015_v2 = vadd.f32 %v4561_v39, %v2740_v12  ;;  %v2737_v12 = vadd.f32 %v2626_v36, %v6360_v44  ;;  %v2750_v4 = vadd.f32 %v4512_v62, %v6400_v5  ;;  %v2733_v39 = vadd.f32 %v6441_v23, %v6348_v38 }
 0x1f3   : > { %v6487_v46 = vpop.f32.mrf.mxu1  ;;  %v6489_v20 = vpop.f32.mrf.mxu0  ;;  %v2747_v23 = vadd.f32 %v6481_v41, %v6397_v28  ;;  %v6882_v41 = vld [vmem:[#allocation37_spill] sm:$0xff] }
 0x1f4   : > { %6877 = vst [vmem:[#allocation23_spill] sm:$0xff] %v6489_v20  ;;  %v3012_v30 = vadd.f32 %v2901_v3, %v2737_v12 }
 0x1f5   : > { %v4515_v6 = vpop.f32.mrf.mxu1  ;;  %v6491_v48 = vpop.f32.mrf.mxu0 }
 0x1f6   : > { %v2752_v49 = vadd.f32 %v4515_v6, %v6407_v32  ;;  %v3011_v32 = vadd.f32 %v6457_v26, %v2736_v61 }
 0x1f7   : > { %v2696_v55 = vpop.f32.mrf.mxu1  ;;  %v6493_v11 = vpop.f32.mrf.mxu0 }
 0x1f8   : > { %6878 = vst [vmem:[#allocation29_spill] sm:$0xff] %v6493_v11  ;;  %v2479_v11 = vadd.f32 %v6422_v37, %v2207_v50  ;;  %v3013_v37 = vadd.f32 %v4558_v53, %v2738_v29  ;;  %v3051_v50 = vadd.f32 %v6510_v25, %v3012_v30 }
 0x1f9   : > { %v4518_v51 = vpop.f32.mrf.mxu1  ;;  %v4576_v60 = vpop.f32.mrf.mxu0 }
 0x1fa   : > { %v2754_v10 = vadd.f32 %v4518_v51, %v6413_v34  ;;  %v3054_v34 = vadd.f32 %v6510_v25, %v3015_v2  ;;  %v3052_v36 = vadd.f32 %v6510_v25, %v3013_v37  ;;  %v3025_v26 = vadd.f32 %v4576_v60, %v2750_v4 }
 0x1fb   : > { %v2706_v43 = vpop.f32.mrf.mxu1  ;;  %v6495_v59 = vpop.f32.mrf.mxu0  ;;  %v3008_v60 = vadd.f32 %v6455_v15, %v2733_v39  ;;  %v3083_v38 = vmax.f32 %v3051_v50, 0.0  ;;  %v6888_v61 = vld [vmem:[#allocation23_spill] sm:$0xff]  ;;  %v6895_v50 = vld [vmem:[#allocation13_spill] sm:$0xff] }
 0x1fc   : > { %v2753_v9 = vadd.f32 %v2706_v43, %v6416_v54  ;;  %v3053_v43 = vadd.f32 %v6510_v25, %v3014_v31  ;;  %v3086_v35 = vmax.f32 %v3054_v34, 0.0  ;;  %v3064_v6 = vadd.f32 %v6510_v25, %v3025_v26  ;;  %v6885_v34 = vld [vmem:[#allocation22_spill] sm:$0xff]  ;;  %v6897_v39 = vld [vmem:[#allocation11_spill] sm:$0xff] }
 0x1fd   : > { %v4579_v27 = vpop.f32.mrf.mxu0  ;;  %v4521_v17 = vpop.f32.mrf.mxu1  ;;  %v3047_v28 = vadd.f32 %v6510_v25, %v3008_v60 }
 0x1fe   : > { %v2756_v42 = vadd.f32 %v4521_v17, %v2480_v14  ;;  %v3027_v54 = vadd.f32 %v4579_v27, %v2752_v49  ;;  %v3096_v37 = vmax.f32 %v3064_v6, 0.0  ;;  %v6902_v6 = vld [vmem:[#allocation28_spill] sm:$0xff] }
 0x1ff   : > { %v2971_v1 = vpop.f32.mrf.mxu0  ;;  %v2716_v47 = vpop.f32.mrf.mxu1  ;;  %v6881_v27 = vld [vmem:[#allocation29_spill] sm:$0xff] }
 0x200   : > { %v2755_v52 = vadd.f32 %v2716_v47, %v2479_v11  ;;  %v3066_v5 = vadd.f32 %v6510_v25, %v3027_v54  ;;  %v6879_v11 = vld [vmem:[#allocation36_spill] sm:$0xff]  ;;  %v3022_v29 = vadd.f32 %v6881_v27, %v2747_v23  ;;  %v6889_v54 = vld [vmem:[#allocation39_spill] sm:$0xff] }
 0x201   : > { %v4582_v20 = vpop.f32.mrf.mxu0 }
 0x202   : > { %v3029_v8 = vadd.f32 %v4582_v20, %v2754_v10 }
 0x203   : > { %v2981_v45 = vpop.f32.mrf.mxu0 }
 0x204   : > { %v3028_v14 = vadd.f32 %v2981_v45, %v2753_v9  ;;  %v3068_v44 = vadd.f32 %v6510_v25, %v3029_v8  ;;  %v2735_v45 = vadd.f32 %v6449_v7, %v6354_v24  ;;  %v3085_v24 = vmax.f32 %v3053_v43, 0.0  ;;  %v6883_v9 = vld [vmem:[#allocation17_spill] sm:$0xff]  ;;  %v6884_v8 = vld [vmem:[#allocation30_spill] sm:$0xff] }
 0x205   : > { %v4585_v33 = vpop.f32.mrf.mxu0  ;;  %v2749_v7 = vadd.f32 %v6487_v46, %v6403_v19  ;;  %v3061_v43 = vadd.f32 %v6510_v25, %v3022_v29 }
 0x206   : > { %v3031_v58 = vadd.f32 %v4585_v33, %v2756_v42  ;;  %v2751_v42 = vadd.f32 %v2696_v55, %v6411_v40  ;;  %v3067_v53 = vadd.f32 %v6510_v25, %v3028_v14  ;;  %v2734_v40 = vadd.f32 %v6437_v16, %v6345_v56  ;;  %v6886_v14 = vld [vmem:[#allocation34_spill] sm:$0xff] }
 0x207   : > { %v2991_v17 = vpop.f32.mrf.mxu0  ;;  %v3010_v3 = vadd.f32 %v6459_v63, %v2735_v45  ;;  %v3100_v62 = vmax.f32 %v3068_v44, 0.0  ;;  %v3050_v56 = vadd.f32 %v6510_v25, %v3011_v32  ;;  %v3084_v16 = vmax.f32 %v3052_v36, 0.0  ;;  %v6891_v45 = vld [vmem:[#allocation15_spill] sm:$0xff]  ;;  %v6892_v36 = vld [vmem:[#allocation42_spill] sm:$0xff] }
 0x208   : > { %v3070_v51 = vadd.f32 %v6510_v25, %v3031_v58  ;;  %v3030_v18 = vadd.f32 %v2991_v17, %v2755_v52  ;;  %v3026_v0 = vadd.f32 %v2971_v1, %v2751_v42  ;;  %v3009_v1 = vadd.f32 %v6453_v21, %v2734_v40 }
 0x209   : > { %v2748_v63 = vadd.f32 %v6477_v57, %v6394_v22  ;;  %v3024_v13 = vadd.f32 %v6495_v59, %v2749_v7  ;;  %v3099_v46 = vmax.f32 %v3067_v53, 0.0  ;;  %v3049_v10 = vadd.f32 %v6510_v25, %v3010_v3  ;;  %v6880_v57 = vld [vmem:[#allocation26_spill] sm:$0xff]  ;;  %v6894_v3 = vld [vmem:[#allocation32_spill] sm:$0xff] }
 0x20a   : > { %v3102_v20 = vmax.f32 %v3070_v51, 0.0  ;;  %v3069_v2 = vadd.f32 %v6510_v25, %v3030_v18  ;;  %v3065_v19 = vadd.f32 %v6510_v25, %v3026_v0  ;;  %v3098_v22 = vmax.f32 %v3066_v5, 0.0  ;;  %v6887_v51 = vld [vmem:[#allocation40_spill] sm:$0xff]  ;;  %v6893_v53 = vld [vmem:[#allocation38_spill] sm:$0xff] }
 0x20b   : > { %v3023_v21 = vadd.f32 %v6491_v48, %v2748_v63  ;;  %v3048_v59 = vadd.f32 %v6510_v25, %v3009_v1  ;;  %v3082_v47 = vmax.f32 %v3050_v56, 0.0  ;;  %v2746_v15 = vadd.f32 %v6880_v57, %v6879_v11  ;;  %v6896_v7 = vld [vmem:[#allocation18_spill] sm:$0xff]  ;;  %v6899_v63 = vld [vmem:[#allocation24_spill] sm:$0xff] }
 0x20c   : > { %v3101_v55 = vmax.f32 %v3069_v2, 0.0  ;;  %3975 = vmatprep.subr.mxu1 %v3102_v20  ;;  %v3063_v31 = vadd.f32 %v6510_v25, %v3024_v13  ;;  %v3097_v33 = vmax.f32 %v3065_v19, 0.0  ;;  %v3081_v48 = vmax.f32 %v3049_v10, 0.0  ;;  %v6890_v2 = vld [vmem:[#allocation35_spill] sm:$0xff]  ;;  %v6900_v19 = vld [vmem:[#allocation41_spill] sm:$0xff]  ;;  %v6903_v11 = vld [vmem:[#allocation20_spill] sm:$0xff] }
 0x20d   : > { %3976 = vmatpush3.msra.mxu1 %v3086_v35  ;;  %v2745_v52 = vadd.f32 %v6883_v9, %v6882_v41  ;;  %v3021_v58 = vadd.f32 %v6884_v8, %v2746_v15  ;;  %v3062_v12 = vadd.f32 %v6510_v25, %v3023_v21  ;;  %v3046_v17 = vadd.f32 %v6510_v25, %v6885_v34  ;;  %v6905_v9 = vld [vmem:[#allocation21_spill] sm:$0xff] }
 0x20e   : > { %3977 = vmatprep.subr.mxu1 %v3101_v55  ;;  %v3080_v49 = vmax.f32 %v3048_v59, 0.0  ;;  %v2744_v18 = vadd.f32 %v6887_v51, %v6886_v14  ;;  %v3095_v42 = vmax.f32 %v3063_v31, 0.0  ;;  %v3045_v44 = vadd.f32 %v6510_v25, %v6889_v54  ;;  %v6904_v31 = vld [vmem:[#allocation19_spill] sm:$0xff] }
 0x20f   : > { %3978 = vmatpush3.msra.mxu1 %v3085_v24  ;;  %v3020_v30 = vadd.f32 %v6888_v61, %v2745_v52  ;;  %v3079_v20 = vmax.f32 %v3047_v28, 0.0  ;;  %v2743_v32 = vadd.f32 %v6891_v45, %v6890_v2  ;;  %v3060_v4 = vadd.f32 %v6510_v25, %v3021_v58 }
 0x210   : > { %3979 = vmatprep.subr.mxu1 %v3100_v62  ;;  %v3019_v35 = vadd.f32 %v6892_v36, %v2744_v18  ;;  %v3094_v0 = vmax.f32 %v3062_v12, 0.0  ;;  %v3044_v55 = vadd.f32 %v6510_v25, %v6893_v53  ;;  %v3078_v40 = vmax.f32 %v3046_v17, 0.0  ;;  %v6906_v17 = vld [vmem:[#allocation31_spill] sm:$0xff] }
 0x211   : > { %3980 = vmatpush3.msra.mxu1 %v3084_v16  ;;  %v2742_v24 = vadd.f32 %v6895_v50, %v6894_v3  ;;  %v3018_v26 = vadd.f32 %v6896_v7, %v2743_v32  ;;  %v3059_v5 = vadd.f32 %v6510_v25, %v3020_v30  ;;  %v3093_v62 = vmax.f32 %v3061_v43, 0.0  ;;  %v6898_v16 = vld [vmem:[#allocation33_spill] sm:$0xff] }
 0x212   : > { %3981 = vmatprep.subr.mxu1 %v3099_v46  ;;  %v3043_v1 = vadd.f32 %v6510_v25, %v6897_v39  ;;  %v3077_v56 = vmax.f32 %v3045_v44, 0.0  ;;  %v2741_v13 = vadd.f32 %v6899_v63, %v6898_v16  ;;  %v3058_v60 = vadd.f32 %v6510_v25, %v3019_v35 }
 0x213   : > { %3982 = vmatpush3.msra.mxu1 %v3083_v38  ;;  %v3017_v46 = vadd.f32 %v6900_v19, %v2742_v24  ;;  %v3092_v10 = vmax.f32 %v3060_v4, 0.0  ;;  %v6901_v38 = vld [vmem:[#allocation25_spill] sm:$0xff]  ;;  %v3076_v21 = vmax.f32 %v3044_v55, 0.0  ;;  %v3057_v59 = vadd.f32 %v6510_v25, %v3018_v26 }
 0x214   : > { %3983 = vmatprep.subr.mxu1 %v3098_v22  ;;  %v3042_v23 = vadd.f32 %v6510_v25, %v6901_v38  ;;  %v3016_v22 = vadd.f32 %v6902_v6, %v2741_v13  ;;  %v3041_v57 = vadd.f32 %v6510_v25, %v6903_v11  ;;  %v3075_v15 = vmax.f32 %v3043_v1, 0.0 }
 0x215   : > { %3984 = vmatpush3.msra.mxu1 %v3082_v47  ;;  %v3091_v47 = vmax.f32 %v3059_v5, 0.0  ;;  %v3056_v27 = vadd.f32 %v6510_v25, %v3017_v46  ;;  %v3090_v29 = vmax.f32 %v3058_v60, 0.0  ;;  %v3089_v41 = vmax.f32 %v3057_v59, 0.0 }
 0x216   : > { %3985 = vmatprep.subr.mxu1 %v3097_v33  ;;  %v3040_v33 = vadd.f32 %v6510_v25, %v6904_v31  ;;  %v3074_v28 = vmax.f32 %v3042_v23, 0.0  ;;  %v3039_v52 = vadd.f32 %v6510_v25, %v6905_v9  ;;  %v3073_v8 = vmax.f32 %v3041_v57, 0.0 }
 0x217   : > { %3986 = vmatpush3.msra.mxu1 %v3081_v48  ;;  %v3055_v48 = vadd.f32 %v6510_v25, %v3016_v22  ;;  %v3088_v58 = vmax.f32 %v3056_v27, 0.0 }
 0x218   : > { %3987 = vmatprep.subr.mxu1 %v3096_v37  ;;  %v3072_v12 = vmax.f32 %v3040_v33, 0.0  ;;  %v3071_v34 = vmax.f32 %v3039_v52, 0.0 }
 0x219   : > { %3988 = vmatpush3.msra.mxu1 %v3080_v49  ;;  %v3087_v37 = vmax.f32 %v3055_v48, 0.0 }
 0x21a   : > { %3989 = vmatprep.subr.mxu1 %v3095_v42 }
 0x21b   : > { %3990 = vmatpush3.msra.mxu1 %v3079_v20 }
 0x21c   : > { %3991 = vmatprep.subr.mxu1 %v3094_v0 }
 0x21d   : > { %3992 = vmatpush3.msra.mxu1 %v3078_v40 }
 0x21e   : > { %3993 = vmatprep.subr.mxu1 %v3093_v62 }
 0x21f   : > { %3994 = vmatpush3.msra.mxu1 %v3077_v56 }
 0x220   : > { %3995 = vmatprep.subr.mxu1 %v3092_v10 }
 0x221   : > { %3996 = vmatpush3.msra.mxu1 %v3076_v21 }
 0x222   : > { %3997 = vmatprep.subr.mxu1 %v3091_v47 }
 0x223   : > { %3998 = vmatpush3.msra.mxu1 %v3075_v15 }
 0x224   : > { %3999 = vmatprep.subr.mxu1 %v3090_v29 }
 0x225   : > { %4000 = vmatpush3.msra.mxu1 %v3074_v28 }
 0x226   : > { %4001 = vmatprep.subr.mxu1 %v3089_v41 }
 0x227   : > { %4002 = vmatpush3.msra.mxu1 %v3073_v8 }
 0x228   : > { %4003 = vmatprep.subr.mxu1 %v3088_v58 }
 0x229   : > { %4004 = vmatpush3.msra.mxu1 %v3072_v12 }
 0x22a   : > { %4005 = vmatprep.subr.mxu1 %v3087_v37 }
 0x22b   : > { %4006 = vmatpush3.msra.mxu1 %v3071_v34 }
 0x22c   : > { %3172 = vmatmul.mubr.f32.vlgmr.msra.gmra.mxu1 %v6906_v17 }
 0x2ec   : > { %v4007_v49 = vpop.f32.mrf.mxu1 }
 0x2ee   : > { %v4008_v25 = vpop.f32.mrf.mxu1 }
 0x2ef   : > { %v4009_v14 = vadd.f32 %v4008_v25, %v4007_v49 }
 0x2f1   : > { %3178 = vst.msk [vmem:[%s190_s11] sm:$0xf] %vm3177_vm3, %v4009_v14 }
 0x2f2   : > { %4672 = shalt.err (!%p4669_p3)
}
 0x2f3   : > { %s4673_s30 = scalar_lea.hbm %s3191_s22, 64  ;;  %s4677_s6 = scalar_lea.hbm %s6635_s4, 128 }
 0x2f4   : > { %p4674_p4 = scmp.ne.s32.totalorder %s3191_s22, %s4673_s30  ;;  %p4678_p9 = scmp.lt.s32.totalorder %s3191_s22, %s6635_s4 }
 0x2f5   : > { %p4679_p10 = scmp.lt.s32.totalorder %s4677_s6, %s4673_s30 }
 0x2f6   : > { %p4675_p7 = pnand %p4674_p4, %p4785_p5 }
 0x2f7   : > { %p4680_p11 = por %p4679_p10, %p4678_p9 }
 0x2f8   : > { %p4676_p8 = pneg %p4675_p7 }
 0x2fa   : > { %p4681_p12 = pnand %p4680_p11, %p4676_p8 }
 0x2fc   : > { %4684 = shalt.err (!%p4681_p12)
}
 0x2fd   : > { %4603 = dma.vmem_to_hbm [thread:$0]  (%p4785_p5), %s3194_s12, 64, %s3191_s22, %s3180_s23  }
 0x2fe PF: > { %p4609_p13 = scmp.ge.s32.totalorder %s4719_s18, 2  ;;  %s3205_s9 = sand.u32 1, %s4707_s15  }
 0x2ff   : > { %s3206_s10 = scalar_lea.sflag [#allocation3], %s3205_s9 }
 0x300   : > { %p4606_p0 = pnand %p4609_p13, %p4789_p6 }
 0x302   : > { %p4607_p1 = pneg %p4606_p0 }
 0x304   : > { %4702 = dma.done.wait (%p4607_p1), %s3206_s10, 64  }
 0x305   : > { %4704 = vsyncadd (%p4607_p1), %s3206_s10, 4294967232  ;;  %p14_p2 = scmp.ge.s32.totalorder %s4772_s21, 4   ;;  %s6907_s15 = smov %s4711_s16 }
 0x306   : > { %s6908_s16 = smov %s4715_s17  ;;  %s6909_s17 = smov %s4783_s24 }
 0x307   : > { %s6910_s18 = smov %s4772_s21  ;;  %16 = sbr.rel (!%p14_p2) target bundleno = 3 (0x3), region = 79 }
 0x30c   :  { %3211 = vsyncpa [#allocation3], 1 }
 0x30d   :  { %3213 = vsyncpa [#allocation3 + $0x1], 1 }

</bundles_post_ra>
